<compile_context>
chip_gen: v7x
topology: tpu7x:2x2x1
jax: 0.10.0
libtpu: 0.0.40
codegen_flags: <defaults>
</compile_context>

<pallas_src>
import functools

import jax
import jax.numpy as jnp
from jax import lax
from jax.experimental import pallas as pl
from jax.experimental.pallas import tpu as pltpu


# ----------------------------------------------------------------------------
# Fused Conv3x3 + affine(BN/bias) + ReLU kernel. One batch element per step.
# ----------------------------------------------------------------------------
def _output_block_kernel(x_ref, w_ref, scale_ref, shift_ref, o_ref, *,
                         H, W, C_in, C_out):
    # x_ref:     (H+2, W+2, C_in)  zero-padded NHWC image (one batch element)
    # w_ref:     (9, C_in, C_out)  conv taps, tap index = dh * 3 + dw
    # scale_ref: (C_out, 1)        folded BN scale   (ones if batch_norm=False)
    # shift_ref: (C_out, 1)        folded BN shift + conv bias
    # o_ref:     (C_out, H*W)      channel-major output (lane-dense stores)
    acc = jnp.zeros((H * W, C_out), jnp.float32)
    # Statically unrolled 3x3 taps: each tap is a shifted-window matmul.
    for dh in range(3):
        for dw in range(3):
            patch = x_ref[dh:dh + H, dw:dw + W, :]          # (H, W, C_in)
            patch2d = patch.reshape(H * W, C_in)            # lane dim unchanged
            acc = acc + jnp.dot(patch2d, w_ref[dh * 3 + dw],
                                preferred_element_type=jnp.float32)
    acc_t = acc.T                                           # (C_out, H*W), XLU
    y = acc_t * scale_ref[...] + shift_ref[...]             # per-channel affine
    y = jnp.maximum(y, 0.0)                                 # ReLU
    o_ref[...] = y.astype(o_ref.dtype)


def output_block_forward(x, conv_w, conv_b,
                         bn_gamma=None, bn_beta=None, bn_mean=None, bn_var=None,
                         *, batch_norm=True, eps=1e-5):
    """OutputBlock forward: Conv2d(64->C_out, 3x3, s=1, p=1) [+ BN] + ReLU.

    x:      (N, 64, H, W)  NCHW float32
    conv_w: (C_out, 64, 3, 3), conv_b: (C_out,)
    bn_*:   (C_out,) inference-mode BatchNorm parameters (if batch_norm=True)
    returns (N, C_out, H, W) NCHW
    """
    N, C_in, H, W = x.shape
    C_out = conv_w.shape[0]

    # Fold conv bias + inference-mode BatchNorm into per-channel scale/shift.
    if batch_norm:
        scale = bn_gamma / jnp.sqrt(bn_var + eps)
        shift = (conv_b - bn_mean) * scale + bn_beta
    else:
        scale = jnp.ones((C_out,), jnp.float32)
        shift = conv_b.astype(jnp.float32)
    scale2 = scale.reshape(C_out, 1).astype(jnp.float32)
    shift2 = shift.reshape(C_out, 1).astype(jnp.float32)

    # NCHW -> NHWC so channels (the MXU contraction dim) sit on the lane axis,
    # then zero-pad the spatial dims for "same" 3x3 convolution.
    x_nhwc = jnp.transpose(x, (0, 2, 3, 1))
    x_pad = jnp.pad(x_nhwc, ((0, 0), (1, 1), (1, 1), (0, 0)))

    # (C_out, C_in, 3, 3) -> (3, 3, C_in, C_out) -> (9, C_in, C_out)
    w_taps = jnp.transpose(conv_w, (2, 3, 1, 0)).reshape(9, C_in, C_out)
    w_taps = w_taps.astype(jnp.float32)

    kernel = functools.partial(_output_block_kernel,
                               H=H, W=W, C_in=C_in, C_out=C_out)

    itemsize = jnp.dtype(x.dtype).itemsize
    flops = 2 * N * H * W * C_out * 9 * C_in
    bytes_accessed = (x_pad.size * itemsize + w_taps.size * 4
                      + N * C_out * H * W * itemsize)

    # Grid over batch; each step's working set (~100 KiB) fits comfortably in
    # VMEM on v5e/v6e/v7x.  For large H*W, tile the H dimension as well.
    out = pl.pallas_call(
        kernel,
        out_shape=jax.ShapeDtypeStruct((N, C_out, H * W), x.dtype),
        grid=(N,),
        in_specs=[
            pl.BlockSpec((None, H + 2, W + 2, C_in), lambda n: (n, 0, 0, 0)),
            pl.BlockSpec((9, C_in, C_out), lambda n: (0, 0, 0)),
            pl.BlockSpec((C_out, 1), lambda n: (0, 0)),
            pl.BlockSpec((C_out, 1), lambda n: (0, 0)),
        ],
        out_specs=pl.BlockSpec((None, C_out, H * W), lambda n: (n, 0, 0)),
        compiler_params=pltpu.CompilerParams(
            dimension_semantics=("parallel",),
        ),
        cost_estimate=pl.CostEstimate(flops=flops, transcendentals=0,
                                      bytes_accessed=bytes_accessed),
    )(x_pad, w_taps, scale2, shift2)

    # (N, C_out, H*W) -> (N, C_out, H, W): pure minor-dim split, no copy.
    return out.reshape(N, C_out, H, W)


# ----------------------------------------------------------------------------
# Pure-JAX reference for correctness checking.
# ----------------------------------------------------------------------------
def _reference(x, conv_w, conv_b, gamma, beta, mean, var, eps=1e-5):
    y = lax.conv_general_dilated(
        x, conv_w, window_strides=(1, 1), padding=((1, 1), (1, 1)),
        dimension_numbers=("NCHW", "OIHW", "NCHW"),
        precision=lax.Precision.HIGHEST)
    y = y + conv_b.reshape(1, -1, 1, 1)
    y = (y - mean.reshape(1, -1, 1, 1)) / jnp.sqrt(var.reshape(1, -1, 1, 1) + eps)
    y = y * gamma.reshape(1, -1, 1, 1) + beta.reshape(1, -1, 1, 1)
    return jnp.maximum(y, 0.0)


if __name__ == "__main__":
    key = jax.random.PRNGKey(0)
    kx, kw, kb, kg, kbe, km, kv = jax.random.split(key, 7)

    # Module fixes in_channels = 64; pick small batch/spatial and out_channels=8.
    N, C_in, H, W = 2, 64, 16, 16
    C_out = 8

    x = jax.random.normal(kx, (N, C_in, H, W), jnp.float32)

    # kaiming_normal_(mode='fan_out', nonlinearity='relu') style init.
    fan_out = C_out * 3 * 3
    conv_w = ((2.0 / fan_out) ** 0.5) * jax.random.normal(
        kw, (C_out, C_in, 3, 3), jnp.float32)
    conv_b = 0.1 * jax.random.normal(kb, (C_out,), jnp.float32)

    bn_gamma = 1.0 + 0.1 * jax.random.normal(kg, (C_out,), jnp.float32)
    bn_beta = 0.1 * jax.random.normal(kbe, (C_out,), jnp.float32)
    bn_mean = 0.1 * jax.random.normal(km, (C_out,), jnp.float32)
    bn_var = jnp.abs(1.0 + 0.1 * jax.random.normal(kv, (C_out,), jnp.float32))

    y = output_block_forward(x, conv_w, conv_b,
                             bn_gamma, bn_beta, bn_mean, bn_var,
                             batch_norm=True)
    y = jax.block_until_ready(y)

    y_ref = _reference(x, conv_w, conv_b, bn_gamma, bn_beta, bn_mean, bn_var)

    assert y.shape == (N, C_out, H, W) and y.dtype == x.dtype
    max_err = float(jnp.max(jnp.abs(y - y_ref)))
    assert bool(jnp.allclose(y, y_ref, atol=2e-2, rtol=2e-2)), max_err
    print("KERNEL_OK")
</pallas_src>

<mosaic_0001>
module attributes {stable_mosaic.version = 11 : i64} {
  func.func @_output_block_kernel(%arg0: i32, %arg1: memref<1x18x18x64xf32, #tpu.memory_space<vmem>>, %arg2: memref<9x64x8xf32, #tpu.memory_space<vmem>>, %arg3: memref<8x1xf32, #tpu.memory_space<vmem>>, %arg4: memref<8x1xf32, #tpu.memory_space<vmem>>, %arg5: memref<1x8x256xf32, #tpu.memory_space<vmem>>) attributes {dimension_semantics = [#tpu.dimension_semantics<parallel>], iteration_bounds = array<i64: 2>, scalar_prefetch = 0 : i64, scratch_operands = 0 : i64, tpu.core_type = #tpu.core_type<tc>, window_params = [{transform_indices = @transform_0, window_bounds = array<i64: 1, 18, 18, 64>}, {pipeline_mode = #tpu.pipeline_mode<synchronous>, transform_indices = @transform_1, window_bounds = array<i64: 9, 64, 8>}, {pipeline_mode = #tpu.pipeline_mode<synchronous>, transform_indices = @transform_2, window_bounds = array<i64: 8, 1>}, {pipeline_mode = #tpu.pipeline_mode<synchronous>, transform_indices = @transform_3, window_bounds = array<i64: 8, 1>}, {transform_indices = @transform_4, window_bounds = array<i64: 1, 8, 256>}]} {
    %cst = arith.constant 0.000000e+00 : f32
    %0 = vector.broadcast %cst : f32 to vector<256x8xf32>
    %c0 = arith.constant 0 : index
    %c0_0 = arith.constant 0 : index
    %c0_1 = arith.constant 0 : index
    %c0_2 = arith.constant 0 : index
    %1 = vector.load %arg1[%c0, %c0_0, %c0_1, %c0_2] : memref<1x18x18x64xf32, #tpu.memory_space<vmem>>, vector<1x16x16x64xf32>
    %2 = vector.shape_cast %1 : vector<1x16x16x64xf32> to vector<16x16x64xf32>
    %3 = vector.shape_cast %2 : vector<16x16x64xf32> to vector<256x64xf32>
    %c0_3 = arith.constant 0 : index
    %c0_4 = arith.constant 0 : index
    %c0_5 = arith.constant 0 : index
    %4 = vector.load %arg2[%c0_3, %c0_4, %c0_5] : memref<9x64x8xf32, #tpu.memory_space<vmem>>, vector<1x64x8xf32>
    %5 = vector.shape_cast %4 : vector<1x64x8xf32> to vector<64x8xf32>
    %cst_6 = arith.constant dense<0.000000e+00> : vector<256x8xf32>
    %6 = tpu.matmul %3, %5, %cst_6 {dimension_numbers = #tpu.dot_dimension_numbers<[1], [0], [0], [1], [0, 0, 1, 1], [], []>} : vector<256x64xf32>, vector<64x8xf32>, vector<256x8xf32> -> vector<256x8xf32>
    %7 = arith.addf %0, %6 : vector<256x8xf32>
    %c0_7 = arith.constant 0 : index
    %c0_8 = arith.constant 0 : index
    %c1 = arith.constant 1 : index
    %c0_9 = arith.constant 0 : index
    %8 = vector.load %arg1[%c0_7, %c0_8, %c1, %c0_9] : memref<1x18x18x64xf32, #tpu.memory_space<vmem>>, vector<1x16x16x64xf32>
    %9 = vector.shape_cast %8 : vector<1x16x16x64xf32> to vector<16x16x64xf32>
    %10 = vector.shape_cast %9 : vector<16x16x64xf32> to vector<256x64xf32>
    %c1_10 = arith.constant 1 : index
    %c0_11 = arith.constant 0 : index
    %c0_12 = arith.constant 0 : index
    %11 = vector.load %arg2[%c1_10, %c0_11, %c0_12] : memref<9x64x8xf32, #tpu.memory_space<vmem>>, vector<1x64x8xf32>
    %12 = vector.shape_cast %11 : vector<1x64x8xf32> to vector<64x8xf32>
    %cst_13 = arith.constant dense<0.000000e+00> : vector<256x8xf32>
    %13 = tpu.matmul %10, %12, %cst_13 {dimension_numbers = #tpu.dot_dimension_numbers<[1], [0], [0], [1], [0, 0, 1, 1], [], []>} : vector<256x64xf32>, vector<64x8xf32>, vector<256x8xf32> -> vector<256x8xf32>
    %14 = arith.addf %7, %13 : vector<256x8xf32>
    %c0_14 = arith.constant 0 : index
    %c0_15 = arith.constant 0 : index
    %c2 = arith.constant 2 : index
    %c0_16 = arith.constant 0 : index
    %15 = vector.load %arg1[%c0_14, %c0_15, %c2, %c0_16] : memref<1x18x18x64xf32, #tpu.memory_space<vmem>>, vector<1x16x16x64xf32>
    %16 = vector.shape_cast %15 : vector<1x16x16x64xf32> to vector<16x16x64xf32>
    %17 = vector.shape_cast %16 : vector<16x16x64xf32> to vector<256x64xf32>
    %c2_17 = arith.constant 2 : index
    %c0_18 = arith.constant 0 : index
    %c0_19 = arith.constant 0 : index
    %18 = vector.load %arg2[%c2_17, %c0_18, %c0_19] : memref<9x64x8xf32, #tpu.memory_space<vmem>>, vector<1x64x8xf32>
    %19 = vector.shape_cast %18 : vector<1x64x8xf32> to vector<64x8xf32>
    %cst_20 = arith.constant dense<0.000000e+00> : vector<256x8xf32>
    %20 = tpu.matmul %17, %19, %cst_20 {dimension_numbers = #tpu.dot_dimension_numbers<[1], [0], [0], [1], [0, 0, 1, 1], [], []>} : vector<256x64xf32>, vector<64x8xf32>, vector<256x8xf32> -> vector<256x8xf32>
    %21 = arith.addf %14, %20 : vector<256x8xf32>
    %c0_21 = arith.constant 0 : index
    %c1_22 = arith.constant 1 : index
    %c0_23 = arith.constant 0 : index
    %c0_24 = arith.constant 0 : index
    %22 = vector.load %arg1[%c0_21, %c1_22, %c0_23, %c0_24] : memref<1x18x18x64xf32, #tpu.memory_space<vmem>>, vector<1x16x16x64xf32>
    %23 = vector.shape_cast %22 : vector<1x16x16x64xf32> to vector<16x16x64xf32>
    %24 = vector.shape_cast %23 : vector<16x16x64xf32> to vector<256x64xf32>
    %c3 = arith.constant 3 : index
    %c0_25 = arith.constant 0 : index
    %c0_26 = arith.constant 0 : index
    %25 = vector.load %arg2[%c3, %c0_25, %c0_26] : memref<9x64x8xf32, #tpu.memory_space<vmem>>, vector<1x64x8xf32>
    %26 = vector.shape_cast %25 : vector<1x64x8xf32> to vector<64x8xf32>
    %cst_27 = arith.constant dense<0.000000e+00> : vector<256x8xf32>
    %27 = tpu.matmul %24, %26, %cst_27 {dimension_numbers = #tpu.dot_dimension_numbers<[1], [0], [0], [1], [0, 0, 1, 1], [], []>} : vector<256x64xf32>, vector<64x8xf32>, vector<256x8xf32> -> vector<256x8xf32>
    %28 = arith.addf %21, %27 : vector<256x8xf32>
    %c0_28 = arith.constant 0 : index
    %c1_29 = arith.constant 1 : index
    %c1_30 = arith.constant 1 : index
    %c0_31 = arith.constant 0 : index
    %29 = vector.load %arg1[%c0_28, %c1_29, %c1_30, %c0_31] : memref<1x18x18x64xf32, #tpu.memory_space<vmem>>, vector<1x16x16x64xf32>
    %30 = vector.shape_cast %29 : vector<1x16x16x64xf32> to vector<16x16x64xf32>
    %31 = vector.shape_cast %30 : vector<16x16x64xf32> to vector<256x64xf32>
    %c4 = arith.constant 4 : index
    %c0_32 = arith.constant 0 : index
    %c0_33 = arith.constant 0 : index
    %32 = vector.load %arg2[%c4, %c0_32, %c0_33] : memref<9x64x8xf32, #tpu.memory_space<vmem>>, vector<1x64x8xf32>
    %33 = vector.shape_cast %32 : vector<1x64x8xf32> to vector<64x8xf32>
    %cst_34 = arith.constant dense<0.000000e+00> : vector<256x8xf32>
    %34 = tpu.matmul %31, %33, %cst_34 {dimension_numbers = #tpu.dot_dimension_numbers<[1], [0], [0], [1], [0, 0, 1, 1], [], []>} : vector<256x64xf32>, vector<64x8xf32>, vector<256x8xf32> -> vector<256x8xf32>
    %35 = arith.addf %28, %34 : vector<256x8xf32>
    %c0_35 = arith.constant 0 : index
    %c1_36 = arith.constant 1 : index
    %c2_37 = arith.constant 2 : index
    %c0_38 = arith.constant 0 : index
    %36 = vector.load %arg1[%c0_35, %c1_36, %c2_37, %c0_38] : memref<1x18x18x64xf32, #tpu.memory_space<vmem>>, vector<1x16x16x64xf32>
    %37 = vector.shape_cast %36 : vector<1x16x16x64xf32> to vector<16x16x64xf32>
    %38 = vector.shape_cast %37 : vector<16x16x64xf32> to vector<256x64xf32>
    %c5 = arith.constant 5 : index
    %c0_39 = arith.constant 0 : index
    %c0_40 = arith.constant 0 : index
    %39 = vector.load %arg2[%c5, %c0_39, %c0_40] : memref<9x64x8xf32, #tpu.memory_space<vmem>>, vector<1x64x8xf32>
    %40 = vector.shape_cast %39 : vector<1x64x8xf32> to vector<64x8xf32>
    %cst_41 = arith.constant dense<0.000000e+00> : vector<256x8xf32>
    %41 = tpu.matmul %38, %40, %cst_41 {dimension_numbers = #tpu.dot_dimension_numbers<[1], [0], [0], [1], [0, 0, 1, 1], [], []>} : vector<256x64xf32>, vector<64x8xf32>, vector<256x8xf32> -> vector<256x8xf32>
    %42 = arith.addf %35, %41 : vector<256x8xf32>
    %c0_42 = arith.constant 0 : index
    %c2_43 = arith.constant 2 : index
    %c0_44 = arith.constant 0 : index
    %c0_45 = arith.constant 0 : index
    %43 = vector.load %arg1[%c0_42, %c2_43, %c0_44, %c0_45] : memref<1x18x18x64xf32, #tpu.memory_space<vmem>>, vector<1x16x16x64xf32>
    %44 = vector.shape_cast %43 : vector<1x16x16x64xf32> to vector<16x16x64xf32>
    %45 = vector.shape_cast %44 : vector<16x16x64xf32> to vector<256x64xf32>
    %c6 = arith.constant 6 : index
    %c0_46 = arith.constant 0 : index
    %c0_47 = arith.constant 0 : index
    %46 = vector.load %arg2[%c6, %c0_46, %c0_47] : memref<9x64x8xf32, #tpu.memory_space<vmem>>, vector<1x64x8xf32>
    %47 = vector.shape_cast %46 : vector<1x64x8xf32> to vector<64x8xf32>
    %cst_48 = arith.constant dense<0.000000e+00> : vector<256x8xf32>
    %48 = tpu.matmul %45, %47, %cst_48 {dimension_numbers = #tpu.dot_dimension_numbers<[1], [0], [0], [1], [0, 0, 1, 1], [], []>} : vector<256x64xf32>, vector<64x8xf32>, vector<256x8xf32> -> vector<256x8xf32>
    %49 = arith.addf %42, %48 : vector<256x8xf32>
    %c0_49 = arith.constant 0 : index
    %c2_50 = arith.constant 2 : index
    %c1_51 = arith.constant 1 : index
    %c0_52 = arith.constant 0 : index
    %50 = vector.load %arg1[%c0_49, %c2_50, %c1_51, %c0_52] : memref<1x18x18x64xf32, #tpu.memory_space<vmem>>, vector<1x16x16x64xf32>
    %51 = vector.shape_cast %50 : vector<1x16x16x64xf32> to vector<16x16x64xf32>
    %52 = vector.shape_cast %51 : vector<16x16x64xf32> to vector<256x64xf32>
    %c7 = arith.constant 7 : index
    %c0_53 = arith.constant 0 : index
    %c0_54 = arith.constant 0 : index
    %53 = vector.load %arg2[%c7, %c0_53, %c0_54] : memref<9x64x8xf32, #tpu.memory_space<vmem>>, vector<1x64x8xf32>
    %54 = vector.shape_cast %53 : vector<1x64x8xf32> to vector<64x8xf32>
    %cst_55 = arith.constant dense<0.000000e+00> : vector<256x8xf32>
    %55 = tpu.matmul %52, %54, %cst_55 {dimension_numbers = #tpu.dot_dimension_numbers<[1], [0], [0], [1], [0, 0, 1, 1], [], []>} : vector<256x64xf32>, vector<64x8xf32>, vector<256x8xf32> -> vector<256x8xf32>
    %56 = arith.addf %49, %55 : vector<256x8xf32>
    %c0_56 = arith.constant 0 : index
    %c2_57 = arith.constant 2 : index
    %c2_58 = arith.constant 2 : index
    %c0_59 = arith.constant 0 : index
    %57 = vector.load %arg1[%c0_56, %c2_57, %c2_58, %c0_59] : memref<1x18x18x64xf32, #tpu.memory_space<vmem>>, vector<1x16x16x64xf32>
    %58 = vector.shape_cast %57 : vector<1x16x16x64xf32> to vector<16x16x64xf32>
    %59 = vector.shape_cast %58 : vector<16x16x64xf32> to vector<256x64xf32>
    %c8 = arith.constant 8 : index
    %c0_60 = arith.constant 0 : index
    %c0_61 = arith.constant 0 : index
    %60 = vector.load %arg2[%c8, %c0_60, %c0_61] : memref<9x64x8xf32, #tpu.memory_space<vmem>>, vector<1x64x8xf32>
    %61 = vector.shape_cast %60 : vector<1x64x8xf32> to vector<64x8xf32>
    %cst_62 = arith.constant dense<0.000000e+00> : vector<256x8xf32>
    %62 = tpu.matmul %59, %61, %cst_62 {dimension_numbers = #tpu.dot_dimension_numbers<[1], [0], [0], [1], [0, 0, 1, 1], [], []>} : vector<256x64xf32>, vector<64x8xf32>, vector<256x8xf32> -> vector<256x8xf32>
    %63 = arith.addf %56, %62 : vector<256x8xf32>
    %64 = tpu.transpose %63, [1, 0] : vector<256x8xf32> -> vector<8x256xf32>
    %c0_63 = arith.constant 0 : index
    %c0_64 = arith.constant 0 : index
    %65 = vector.load %arg3[%c0_63, %c0_64] : memref<8x1xf32, #tpu.memory_space<vmem>>, vector<8x1xf32>
    %66 = vector.broadcast %65 : vector<8x1xf32> to vector<8x256xf32>
    %67 = arith.mulf %64, %66 : vector<8x256xf32>
    %c0_65 = arith.constant 0 : index
    %c0_66 = arith.constant 0 : index
    %68 = vector.load %arg4[%c0_65, %c0_66] : memref<8x1xf32, #tpu.memory_space<vmem>>, vector<8x1xf32>
    %69 = vector.broadcast %68 : vector<8x1xf32> to vector<8x256xf32>
    %70 = arith.addf %67, %69 : vector<8x256xf32>
    %cst_67 = arith.constant 0.000000e+00 : f32
    %71 = vector.broadcast %cst_67 : f32 to vector<8x256xf32>
    %72 = arith.maximumf %70, %71 : vector<8x256xf32>
    %c0_68 = arith.constant 0 : index
    %c0_69 = arith.constant 0 : index
    %c0_70 = arith.constant 0 : index
    %73 = vector.load %arg5[%c0_68, %c0_69, %c0_70] : memref<1x8x256xf32, #tpu.memory_space<vmem>>, vector<1x8x256xf32>
    %74 = vector.shape_cast %73 : vector<1x8x256xf32> to vector<8x256xf32>
    %75 = vector.shape_cast %72 : vector<8x256xf32> to vector<1x8x256xf32>
    tpu.vector_store %arg5[%c0_68, %c0_69, %c0_70], %75 {strides = array<i32>} : memref<1x8x256xf32, #tpu.memory_space<vmem>>, vector<1x8x256xf32>,
    return
  }
  func.func @transform_0(%arg0: i32) -> (i32, i32, i32, i32) {
    %c0_i32 = arith.constant 0 : i32
    %c0_i32_0 = arith.constant 0 : i32
    %c0_i32_1 = arith.constant 0 : i32
    %c0_i32_2 = arith.constant 0 : i32
    return %arg0, %c0_i32, %c0_i32_0, %c0_i32_1 : i32, i32, i32, i32
  }
  func.func @transform_1(%arg0: i32) -> (i32, i32, i32) {
    %c0_i32 = arith.constant 0 : i32
    %c0_i32_0 = arith.constant 0 : i32
    %c0_i32_1 = arith.constant 0 : i32
    %c0_i32_2 = arith.constant 0 : i32
    return %c0_i32, %c0_i32_0, %c0_i32_1 : i32, i32, i32
  }
  func.func @transform_2(%arg0: i32) -> (i32, i32) {
    %c0_i32 = arith.constant 0 : i32
    %c0_i32_0 = arith.constant 0 : i32
    %c0_i32_1 = arith.constant 0 : i32
    return %c0_i32, %c0_i32_0 : i32, i32
  }
  func.func @transform_3(%arg0: i32) -> (i32, i32) {
    %c0_i32 = arith.constant 0 : i32
    %c0_i32_0 = arith.constant 0 : i32
    %c0_i32_1 = arith.constant 0 : i32
    return %c0_i32, %c0_i32_0 : i32, i32
  }
  func.func @transform_4(%arg0: i32) -> (i32, i32, i32) {
    %c0_i32 = arith.constant 0 : i32
    %c0_i32_0 = arith.constant 0 : i32
    %c0_i32_1 = arith.constant 0 : i32
    return %arg0, %c0_i32, %c0_i32_0 : i32, i32, i32
  }
}

</mosaic_0001>

<bundles_post_ra>
// kernel: tpu_custom_call.1
= control target key start
LH: loop header
LB: loop body
LE: loop exit
PB: predicated region body
PF: predicated region fallthrough
CT: control target
= control target key end

     0   :  { %9 = vsyncpa [#allocation3], 0  ;;  %s7097_s0 = inlined_call_operand.vmem [shape: f32[2,18,18,64], index: 0, kind: input, shape index: {}]   ;;  %s7098_s1 = inlined_call_operand.vmem [shape: f32[9,64,8], index: 1, kind: input, shape index: {}]   ;;  %s7099_s2 = inlined_call_operand.vmem [shape: f32[8,1], index: 2, kind: input, shape index: {}]   ;;  %s7100_s3 = inlined_call_operand.vmem [shape: f32[8,1], index: 3, kind: input, shape index: {}]   ;;  %s7101_s4 = inlined_call_operand.hbm [shape: f32[2,8,256], index: 4, kind: output, shape index: {}]  }
   0x1   :  { %11 = vsyncpa [#allocation3 + $0x1], 0  ;;  %s5872_s15 = smov 0   ;;  %s5874_s16 = smov 0  }
   0x2   :  { %s5876_s17 = smov 0   ;;  %s5878_s18 = smov 0  }
   0x3 LB: > { %s5893_s19 = sadd.s32 4294967295, %s5843_s18   ;;  %s3838_s20 = sadd.s32 4294967294, %s5843_s18   ;;  %s5843_s18 = sphi %s5878_s18, %s7230_s18   ;;  %s5839_s17 = sphi %s5876_s17, %s7229_s17   ;;  %s5835_s16 = sphi %s5874_s16, %s7228_s16   ;;  %s5831_s15 = sphi %s5872_s15, %s7227_s15  }
   0x4   : > { %s5897_s21 = sadd.s32 1, %s5843_s18   ;;  %s113_s22 = sadd.s32 1, %s5839_s17 }
   0x5   : > { %s110_s23 = ssub.s32 %s5843_s18, %s5897_s21  ;;  %p123_p0 = scmp.ne.s32.totalorder %s5839_s17, %s5835_s16 }
   0x6   : > { %p111_p1 = scmp.eq.s32.totalorder %s110_s23, 0  ;;  %p124_p2 = scmp.eq.s32.totalorder %s5893_s19, 1 }
   0x7   : > { %p129_p3 = scmp.ne.s32.totalorder %s5835_s16, %s5831_s15  ;;  %p130_p4 = scmp.eq.s32.totalorder %s3838_s20, 1 }
   0x8   : > { %s5908_s24 = scalar_select %p111_p1, %s5839_s17, %s113_s22  }
   0x9   : > { %p5910_p5 = por %p124_p2, %p123_p0  ;;  %p5914_p6 = por %p130_p4, %p129_p3 }
   0xa   : > { %p3841_p7 = scmp.ge.s32.totalorder %s5843_s18, 1  ;;  %p165_p8 = scmp.lt.s32.totalorder %s5843_s18, 3 }
   0xc   : > { %p166_p9 = pnand %p3841_p7, %p165_p8 }
   0xe   : > { %169 = sbr.rel (%p166_p9) target bundleno = 661 (0x295), region = 36 }
  0x15   : > { %v3844_v0 = vld [vmem:[%s7098_s1 + $0x40] sm:$0xff]  ;;  %v3845_v1 = vld [vmem:[%s7098_s1 + $0x48] sm:$0xff]  ;;  %p191_p10 = scmp.lt.s32.totalorder %s5893_s19, 1  ;;  %v3846_v5 = vld [vmem:[%s7098_s1 + $0x50] sm:$0xff]  ;;  %vm277_vm0 = vcmask 523264   ;;  %s4393_s10 = sshll.u32 %s5893_s19, 8 }
  0x16   : > { %v4060_v2 = vld [vmem:[%s7098_s1 + $0x100] sm:$0xff]  ;;  %v5330_v3 = vpack.c.bf16 %v3845_v1, %v3844_v0  ;;  %v4061_v4 = vld [vmem:[%s7098_s1 + $0x108] sm:$0xff]  ;;  %v3847_v6 = vld [vmem:[%s7098_s1 + $0x58] sm:$0xff]  ;;  %s7055_s14 = scalar_lea.hbm %s7101_s4, %s4393_s10 }
  0x17   : > { %v5939_v7 = vpack.c.bf16 %v4061_v4, %v4060_v2  ;;  %v5334_v8 = vpack.c.bf16 %v3847_v6, %v3846_v5  ;;  %v4062_v9 = vld [vmem:[%s7098_s1 + $0x110] sm:$0xff]  ;;  %v4063_v10 = vld [vmem:[%s7098_s1 + $0x118] sm:$0xff]  ;;  %v3848_v11 = vld [vmem:[%s7098_s1 + $0x60] sm:$0xff]  ;;  %s192_s28 = scalar_select %p191_p10, %s5893_s19, 1 }
  0x18   : > { %5331 = vmatprep.subr.bf16.mxu1 %v5330_v3  ;;  %v5951_v12 = vpack.c.bf16 %v4063_v10, %v4062_v9  ;;  %v3849_v13 = vld [vmem:[%s7098_s1 + $0x68] sm:$0xff]  ;;  %v4064_v14 = vld [vmem:[%s7098_s1 + $0x120] sm:$0xff]  ;;  %v3850_v18 = vld [vmem:[%s7098_s1 + $0x70] sm:$0xff]  ;;  %s5846_s19 = smov [#allocation2]  }
  0x19   : > { %v4065_v15 = vld [vmem:[%s7098_s1 + $0x128] sm:$0xff]  ;;  %5395 = vmatprep.subr.bf16.mxu0 %v5939_v7  ;;  %5333 = vmatpush3.bf16.msra.mxu1 %v5330_v3  ;;  %s5738_s9 = smul.u32 432, %s192_s28  ;;  %v5338_v16 = vpack.c.bf16 %v3849_v13, %v3848_v11  ;;  %v3851_v19 = vld [vmem:[%s7098_s1 + $0x78] sm:$0xff]  ;;  %v4066_v20 = vld [vmem:[%s7098_s1 + $0x130] sm:$0xff]  ;;  %s5785_s23 = sshll.u32 %s5846_s19, 4  ;;  %s5786_s23 = int_to_ptr.vmem [resolvable:$false] %s5785_s23 }
  0x1a   : > { %7149 = vst [vmem:[#allocation5_spill] sm:$0xff] %v5951_v12  ;;  %5397 = vmatpush3.bf16.msra.mxu0 %v5939_v7  ;;  %5335 = vmatprep.subr.bf16.mxu1 %v5334_v8  ;;  %v5965_v17 = vpack.c.bf16 %v4065_v15, %v4064_v14  ;;  %v4067_v21 = vld [vmem:[%s7098_s1 + $0x138] sm:$0xff]  ;;  %v5342_v24 = vpack.c.bf16 %v3851_v19, %v3850_v18  ;;  %v228_v26 = vld [vmem:[%s7098_s1] sm:$0xff]  ;;  %v229_v27 = vld [vmem:[%s7098_s1 + $0x8] sm:$0xff]  ;;  %s5787_s28 = scalar_lea.vmem %s5786_s23, 512 }
  0x1b   : > { %5399 = vmatprep.subr.bf16.mxu0 %v5951_v12  ;;  %s5979_s27 = scalar_lea.vmem %s7097_s0, %s5738_s9  ;;  %v5989_v25 = vpack.c.bf16 %v4067_v21, %v4066_v20  ;;  %v4132_v28 = vld [vmem:[%s7098_s1 + $0x140] sm:$0xff]  ;;  %v4133_v29 = vld [vmem:[%s7098_s1 + $0x148] sm:$0xff]  ;;  %v5346_v30 = vpack.c.bf16 %v229_v27, %v228_v26  ;;  %v4134_v32 = vld [vmem:[%s7098_s1 + $0x150] sm:$0xff] }
  0x1c   : > { %7150 = vst [vmem:[#allocation6_spill] sm:$0xff] %v5965_v17  ;;  %v236_v22 = vld [vmem:[%s5979_s27 + $0x1] sm:$0xff]  ;;  %v4028_v23 = vld [vmem:[%s5979_s27 + $0x19] sm:$0xff]  ;;  %v5410_v31 = vpack.c.bf16 %v4133_v29, %v4132_v28  ;;  %v237_v34 = vld [vmem:[%s5979_s27 + $0x9] sm:$0xff] }
  0x1d   : > { %5337 = vmatpush3.bf16.msra.mxu1 %v5334_v8  ;;  %4770 = vmatprep.mubr.msk.f32.mxu1 %vm277_vm0, %v236_v22  ;;  %7151 = vst [vmem:[#allocation7_spill] sm:$0xff] %v5989_v25  ;;  %v4135_v33 = vld [vmem:[%s7098_s1 + $0x158] sm:$0xff]  ;;  %v230_v35 = vld [vmem:[%s7098_s1 + $0x10] sm:$0xff]  ;;  %v4029_v37 = vld [vmem:[%s5979_s27 + $0x21] sm:$0xff] }
  0x1e   : > { %5401 = vmatpush3.bf16.msra.mxu0 %v5951_v12  ;;  %5339 = vmatprep.subr.bf16.mxu1 %v5338_v16  ;;  %v231_v36 = vld [vmem:[%s7098_s1 + $0x18] sm:$0xff]  ;;  %v5414_v38 = vpack.c.bf16 %v4135_v33, %v4134_v32  ;;  %v4136_v41 = vld [vmem:[%s7098_s1 + $0x160] sm:$0xff]  ;;  %v4137_v42 = vld [vmem:[%s7098_s1 + $0x168] sm:$0xff] }
  0x1f   : > { %5403 = vmatprep.subr.bf16.mxu0 %v5965_v17  ;;  %5026 = vmatprep.mubr.msk.f32.mxu0 %vm277_vm0, %v4028_v23  ;;  %v6023_v39 = vld [vmem:[%s5979_s27 + $0x31] sm:$0xff]  ;;  %v5350_v40 = vpack.c.bf16 %v231_v36, %v230_v35  ;;  %v232_v43 = vld [vmem:[%s7098_s1 + $0x20] sm:$0xff]  ;;  %v233_v44 = vld [vmem:[%s7098_s1 + $0x28] sm:$0xff]  ;;  %v5418_v47 = vpack.c.bf16 %v4137_v42, %v4136_v41 }
  0x20   : > { %v6040_v45 = vld [vmem:[%s5979_s27 + $0x39] sm:$0xff]  ;;  %v6045_v46 = vld [vmem:[%s5979_s27 + $0x49] sm:$0xff]  ;;  %v5354_v50 = vpack.c.bf16 %v233_v44, %v232_v43  ;;  %v6067_v53 = vld [vmem:[%s5979_s27 + $0x51] sm:$0xff] }
  0x21   : > { %5341 = vmatpush3.bf16.msra.mxu1 %v5338_v16  ;;  %v4138_v48 = vld [vmem:[%s7098_s1 + $0x170] sm:$0xff]  ;;  %v4139_v49 = vld [vmem:[%s7098_s1 + $0x178] sm:$0xff]  ;;  %v6070_v54 = vld [vmem:[%s5979_s27 + $0x61] sm:$0xff] }
  0x22   : > { %5405 = vmatpush3.bf16.msra.mxu0 %v5965_v17  ;;  %5343 = vmatprep.subr.bf16.mxu1 %v5342_v24  ;;  %v234_v51 = vld [vmem:[%s7098_s1 + $0x30] sm:$0xff]  ;;  %v235_v52 = vld [vmem:[%s7098_s1 + $0x38] sm:$0xff]  ;;  %v5422_v55 = vpack.c.bf16 %v4139_v49, %v4138_v48  ;;  %v4204_v56 = vld [vmem:[%s7098_s1 + $0x180] sm:$0xff] }
  0x23   : > { %5407 = vmatprep.subr.bf16.mxu0 %v5989_v25  ;;  %v4205_v57 = vld [vmem:[%s7098_s1 + $0x188] sm:$0xff]  ;;  %v5358_v58 = vpack.c.bf16 %v235_v52, %v234_v51  ;;  %v3916_v60 = vld [vmem:[%s7098_s1 + $0x80] sm:$0xff]  ;;  %v6112_v2 = vld [vmem:[%s5979_s27 + $0x91] sm:$0xff] }
  0x24   : > { %v6087_v59 = vld [vmem:[%s5979_s27 + $0x69] sm:$0xff]  ;;  %v6096_v62 = vld [vmem:[%s5979_s27 + $0x79] sm:$0xff]  ;;  %v5426_v63 = vpack.c.bf16 %v4205_v57, %v4204_v56  ;;  %v6109_v1 = vld [vmem:[%s5979_s27 + $0x81] sm:$0xff] }
  0x25   : > { %5345 = vmatpush3.bf16.msra.mxu1 %v5342_v24  ;;  %v3917_v61 = vld [vmem:[%s7098_s1 + $0x88] sm:$0xff]  ;;  %v6124_v3 = vld [vmem:[%s5979_s27 + $0x99] sm:$0xff]  ;;  %v6138_v5 = vld [vmem:[%s5979_s27 + $0xb1] sm:$0xff] }
  0x26   : > { %5409 = vmatpush3.bf16.msra.mxu0 %v5989_v25  ;;  %5347 = vmatprep.subr.bf16.mxu1 %v5346_v30  ;;  %v6100_v0 = vpack.c.bf16 %v3917_v61, %v3916_v60  ;;  %v6127_v4 = vld [vmem:[%s5979_s27 + $0xa9] sm:$0xff]  ;;  %v6141_v6 = vld [vmem:[%s5979_s27 + $0xc1] sm:$0xff]  ;;  %v4207_v11 = vld [vmem:[%s7098_s1 + $0x198] sm:$0xff] }
  0x27   : > { %5411 = vmatprep.subr.bf16.mxu0 %v5410_v31  ;;  %v6152_v8 = vld [vmem:[%s5979_s27 + $0xc9] sm:$0xff]  ;;  %v6155_v9 = vld [vmem:[%s5979_s27 + $0x1a] sm:$0xff]  ;;  %v6178_v15 = vld [vmem:[%s5979_s27 + $0x32] sm:$0xff] }
  0x28   : > { %4771 = vmatmul.mubr.msk.f32.vlgmr.msra.gmra.mrb[0].mxu1 %vm277_vm0, %v237_v34  ;;  %7152 = vst [vmem:[#allocation8_spill] sm:$0xff] %v6152_v8  ;;  %v4206_v10 = vld [vmem:[%s7098_s1 + $0x190] sm:$0xff]  ;;  %v6172_v13 = vld [vmem:[%s5979_s27 + $0x22] sm:$0xff]  ;;  %v6175_v14 = vld [vmem:[%s5979_s27 + $0xd9] sm:$0xff] }
  0x29   : > { %5027 = vmatmul.mubr.msk.f32.vlgmr.msra.gmra.mrb[0].mxu0 %vm277_vm0, %v4029_v37  ;;  %5349 = vmatpush3.bf16.msra.mxu1 %v5346_v30  ;;  %7153 = vst [vmem:[#allocation9_spill] sm:$0xff] %v6175_v14  ;;  %v5430_v16 = vpack.c.bf16 %v4207_v11, %v4206_v10  ;;  %v4208_v18 = vld [vmem:[%s7098_s1 + $0x1a0] sm:$0xff]  ;;  %v4209_v19 = vld [vmem:[%s7098_s1 + $0x1a8] sm:$0xff]  ;;  %v6201_v22 = vld [vmem:[%s5979_s27 + $0xf1] sm:$0xff] }
  0x2a   : > { %5413 = vmatpush3.bf16.msra.mxu0 %v5410_v31  ;;  %4773 = vmatprep.mubr.msk.f32.mxu1 %vm277_vm0, %v4028_v23  ;;  %v6193_v20 = vld [vmem:[%s5979_s27 + $0xe1] sm:$0xff]  ;;  %7155 = vst [vmem:[#allocation11_spill] sm:$0xff] %v6201_v22  ;;  %v6204_v23 = vld [vmem:[%s5979_s27 + $0x4a] sm:$0xff]  ;;  %v5434_v24 = vpack.c.bf16 %v4209_v19, %v4208_v18  ;;  %v4211_v27 = vld [vmem:[%s7098_s1 + $0x1b8] sm:$0xff] }
  0x2b   : > { %5029 = vmatprep.mubr.msk.f32.mxu0 %vm277_vm0, %v6023_v39  ;;  %5415 = vmatprep.subr.bf16.mxu0 %v5414_v38  ;;  %7154 = vst [vmem:[#allocation10_spill] sm:$0xff] %v6193_v20  ;;  %v6198_v21 = vld [vmem:[%s5979_s27 + $0x3a] sm:$0xff]  ;;  %v4210_v26 = vld [vmem:[%s7098_s1 + $0x1b0] sm:$0xff]  ;;  %v6230_v31 = vld [vmem:[%s5979_s27 + $0x62] sm:$0xff] }
  0x2c   : > { %4774 = vmatmul.mubr.msk.f32.gmra.mrb[2].mxu1 %vm277_vm0, %v4029_v37  ;;  %5351 = vmatprep.subr.bf16.mxu1 %v5350_v40  ;;  %v6219_v28 = vld [vmem:[%s5979_s27 + $0xf9] sm:$0xff]  ;;  %v6227_v30 = vld [vmem:[%s5979_s27 + $0x109] sm:$0xff]  ;;  %v5438_v32 = vpack.c.bf16 %v4211_v27, %v4210_v26  ;;  %v6245_v35 = vld [vmem:[%s5979_s27 + $0x111] sm:$0xff] }
  0x2d   : > { %5030 = vmatmul.mubr.msk.f32.gmra.mrb[2].mxu0 %vm277_vm0, %v6040_v45  ;;  %4776 = vmatprep.mubr.msk.f32.mxu1 %vm277_vm0, %v6023_v39  ;;  %7156 = vst [vmem:[#allocation12_spill] sm:$0xff] %v6219_v28  ;;  %v6224_v29 = vld [vmem:[%s5979_s27 + $0x52] sm:$0xff]  ;;  %7157 = vst [vmem:[#allocation13_spill] sm:$0xff] %v6227_v30  ;;  %v4276_v33 = vld [vmem:[%s7098_s1 + $0x1c0] sm:$0xff] }
  0x2e   : > { %5032 = vmatprep.mubr.msk.f32.mxu0 %vm277_vm0, %v6045_v46  ;;  %5417 = vmatpush3.bf16.msra.mxu0 %v5414_v38  ;;  %v4277_v34 = vld [vmem:[%s7098_s1 + $0x1c8] sm:$0xff]  ;;  %7158 = vst [vmem:[#allocation14_spill] sm:$0xff] %v6245_v35  ;;  %v6256_v38 = vld [vmem:[%s5979_s27 + $0x7a] sm:$0xff]  ;;  %v6278_v44 = vld [vmem:[%s5979_s27 + $0x92] sm:$0xff] }
  0x2f   : > { %5419 = vmatprep.subr.bf16.mxu0 %v5418_v47  ;;  %5353 = vmatpush3.bf16.msra.mxu1 %v5350_v40  ;;  %v6250_v36 = vld [vmem:[%s5979_s27 + $0x6a] sm:$0xff]  ;;  %v6253_v37 = vld [vmem:[%s5979_s27 + $0x121] sm:$0xff]  ;;  %v6258_v40 = vpack.c.bf16 %v4277_v34, %v4276_v33  ;;  %v6275_v43 = vld [vmem:[%s5979_s27 + $0x139] sm:$0xff] }
  0x30   : > { %4777 = vmatmul.mubr.msk.f32.gmra.mrb[4].mxu1 %vm277_vm0, %v6040_v45  ;;  %5355 = vmatprep.subr.bf16.mxu1 %v5354_v50  ;;  %7159 = vst [vmem:[#allocation15_spill] sm:$0xff] %v6253_v37  ;;  %v6267_v41 = vld [vmem:[%s5979_s27 + $0x129] sm:$0xff]  ;;  %7161 = vst [vmem:[#allocation17_spill] sm:$0xff] %v6275_v43  ;;  %v6293_v48 = vld [vmem:[%s5979_s27 + $0x9a] sm:$0xff] }
  0x31   : > { %5033 = vmatmul.mubr.msk.f32.gmra.mrb[4].mxu0 %vm277_vm0, %v6067_v53  ;;  %4779 = vmatprep.mubr.msk.f32.mxu1 %vm277_vm0, %v6045_v46  ;;  %7160 = vst [vmem:[#allocation16_spill] sm:$0xff] %v6267_v41  ;;  %v6272_v42 = vld [vmem:[%s5979_s27 + $0x82] sm:$0xff]  ;;  %v6296_v49 = vld [vmem:[%s5979_s27 + $0x151] sm:$0xff]  ;;  %v6308_v51 = vld [vmem:[%s5979_s27 + $0x159] sm:$0xff] }
  0x32   : > { %5035 = vmatprep.mubr.msk.f32.mxu0 %vm277_vm0, %v6070_v54  ;;  %5421 = vmatpush3.bf16.msra.mxu0 %v5418_v47  ;;  %v6288_v47 = vld [vmem:[%s5979_s27 + $0x141] sm:$0xff]  ;;  %7163 = vst [vmem:[#allocation19_spill] sm:$0xff] %v6296_v49  ;;  %7164 = vst [vmem:[#allocation20_spill] sm:$0xff] %v6308_v51  ;;  %v6313_v52 = vld [vmem:[%s5979_s27 + $0xb2] sm:$0xff] }
  0x33   : > { %5423 = vmatprep.subr.bf16.mxu0 %v5422_v55  ;;  %5357 = vmatpush3.bf16.msra.mxu1 %v5354_v50  ;;  %7162 = vst [vmem:[#allocation18_spill] sm:$0xff] %v6288_v47  ;;  %v6299_v50 = vld [vmem:[%s5979_s27 + $0xaa] sm:$0xff]  ;;  %v6319_v56 = vld [vmem:[%s5979_s27 + $0xc2] sm:$0xff]  ;;  %v6337_v61 = vld [vmem:[%s5979_s27 + $0xda] sm:$0xff] }
  0x34   : > { %4780 = vmatmul.mubr.msk.f32.gmra.mrb[6].mxu1 %vm277_vm0, %v6067_v53  ;;  %5359 = vmatprep.subr.bf16.mxu1 %v5358_v58  ;;  %v6328_v57 = vld [vmem:[%s5979_s27 + $0x171] sm:$0xff]  ;;  %v196_v60 = vld [vmem:[%s5979_s27] sm:$0xff]  ;;  %v197_v11 = vld [vmem:[%s5979_s27 + $0x8] sm:$0xff] }
  0x35   : > { %5036 = vmatmul.mubr.msk.f32.gmra.mrb[6].mxu0 %vm277_vm0, %v6087_v59  ;;  %4782 = vmatprep.mubr.msk.f32.mxu1 %vm277_vm0, %v6070_v54  ;;  %7166 = vst [vmem:[#allocation22_spill] sm:$0xff] %v6328_v57  ;;  %v3919_v10 = vld [vmem:[%s7098_s1 + $0x98] sm:$0xff]  ;;  %v3920_v26 = vld [vmem:[%s7098_s1 + $0xa0] sm:$0xff]  ;;  %v3921_v27 = vld [vmem:[%s7098_s1 + $0xa8] sm:$0xff] }
  0x36   : > { %5038 = vmatprep.mubr.msk.f32.mxu0 %vm277_vm0, %v6096_v62  ;;  %5425 = vmatpush3.bf16.msra.mxu0 %v5422_v55  ;;  %v6316_v55 = vld [vmem:[%s5979_s27 + $0x169] sm:$0xff]  ;;  %v6357_v18 = vld [vmem:[%s5979_s27 + $0x18] sm:$0xff] }
  0x37   : > { %5427 = vmatprep.subr.bf16.mxu0 %v5426_v63  ;;  %5361 = vmatpush3.bf16.msra.mxu1 %v5358_v58  ;;  %7165 = vst [vmem:[#allocation21_spill] sm:$0xff] %v6316_v55  ;;  %v6333_v58 = vld [vmem:[%s5979_s27 + $0xca] sm:$0xff]  ;;  %7167 = vst [vmem:[#allocation23_spill] sm:$0xff] %v6357_v18  ;;  %v6360_v19 = vld [vmem:[%s5979_s27 + $0xf2] sm:$0xff] }
  0x38   : > { %4783 = vmatmul.mubr.msk.f32.gmra.mrb[8].mxu1 %vm277_vm0, %v6087_v59  ;;  %5363 = vmatprep.subr.bf16.mxu1 %v6100_v0  ;;  %v6380_v33 = vld [vmem:[%s5979_s27 + $0xfa] sm:$0xff]  ;;  %v6383_v34 = vld [vmem:[%s5979_s27 + $0x30] sm:$0xff] }
  0x39   : > { %5039 = vmatmul.mubr.msk.f32.gmra.mrb[8].mxu0 %vm277_vm0, %v6109_v1  ;;  %4785 = vmatprep.mubr.msk.f32.mxu1 %vm277_vm0, %v6096_v62  ;;  %7169 = vst [vmem:[#allocation25_spill] sm:$0xff] %v6383_v34  ;;  %v6478_v17 = vld [vmem:[%s5979_s27 + $0x90] sm:$0xff] }
  0x3a   : > { %5041 = vmatprep.mubr.msk.f32.mxu0 %vm277_vm0, %v6112_v2  ;;  %7177 = vst [vmem:[#allocation33_spill] sm:$0xff] %v6478_v17  ;;  %v6495_v12 = vld [vmem:[%s5979_s27 + $0x172] sm:$0xff] }
  0x3b   : > { %7180 = vst [vmem:[#allocation36_spill] sm:$0xff] %v6495_v12 }
  0x3c   : > { %4786 = vmatmul.mubr.msk.f32.gmra.mrb[10].mxu1 %vm277_vm0, %v6109_v1 }
  0x3d   : > { %5042 = vmatmul.mubr.msk.f32.gmra.mrb[10].mxu0 %vm277_vm0, %v6124_v3  ;;  %4788 = vmatprep.mubr.msk.f32.mxu1 %vm277_vm0, %v6112_v2 }
  0x3e   : > { %5044 = vmatprep.mubr.msk.f32.mxu0 %vm277_vm0, %v6127_v4 }
  0x40   : > { %4789 = vmatmul.mubr.msk.f32.gmra.mrb[12].mxu1 %vm277_vm0, %v6124_v3 }
  0x41   : > { %5045 = vmatmul.mubr.msk.f32.gmra.mrb[12].mxu0 %vm277_vm0, %v6138_v5  ;;  %4791 = vmatprep.mubr.msk.f32.mxu1 %vm277_vm0, %v6127_v4 }
  0x42   : > { %5047 = vmatprep.mubr.msk.f32.mxu0 %vm277_vm0, %v6141_v6 }
  0x44   : > { %4792 = vmatmul.mubr.msk.f32.gmra.mrb[14].mxu1 %vm277_vm0, %v6138_v5 }
  0x45   : > { %5048 = vmatmul.mubr.msk.f32.gmra.mrb[14].mxu0 %vm277_vm0, %v6152_v8  ;;  %4794 = vmatprep.mubr.msk.f32.mxu1 %vm277_vm0, %v6141_v6 }
  0x46   : > { %5090 = vmatprep.mubr.msk.f32.mxu0 %vm277_vm0, %v6155_v9 }
  0x48   : > { %4795 = vmatmul.mubr.msk.f32.gmra.mrb[16].mxu1 %vm277_vm0, %v6152_v8  ;;  %v4280_v8 = vld [vmem:[%s7098_s1 + $0x1e0] sm:$0xff] }
  0x49   : > { %5091 = vmatmul.mubr.msk.f32.vlgmr.msra.gmra.mrb[0].mxu0 %vm277_vm0, %v6172_v13  ;;  %4797 = vmatprep.mubr.msk.f32.mxu1 %vm277_vm0, %v6175_v14  ;;  %v6538_v14 = vld [vmem:[%s5979_s27 + $0xd8] sm:$0xff] }
  0x4a   : > { %5429 = vmatpush3.bf16.msra.mxu0 %v5426_v63  ;;  %5093 = vmatprep.mubr.msk.f32.mxu0 %vm277_vm0, %v6178_v15  ;;  %v3918_v63 = vld [vmem:[%s7098_s1 + $0x90] sm:$0xff]  ;;  %7187 = vst [vmem:[#allocation43_spill] sm:$0xff] %v6538_v14 }
  0x4b   : > { %5431 = vmatprep.subr.bf16.mxu0 %v5430_v16 }
  0x4c   : > { %4798 = vmatmul.mubr.msk.f32.gmra.mrb[18].mxu1 %vm277_vm0, %v6193_v20  ;;  %v4278_v20 = vld [vmem:[%s7098_s1 + $0x1d0] sm:$0xff] }
  0x4d   : > { %5094 = vmatmul.mubr.msk.f32.gmra.mrb[2].mxu0 %vm277_vm0, %v6198_v21  ;;  %4800 = vmatprep.mubr.msk.f32.mxu1 %vm277_vm0, %v6201_v22  ;;  %v6515_v22 = vld [vmem:[%s5979_s27 + $0x18a] sm:$0xff] }
  0x4e   : > { %5096 = vmatprep.mubr.msk.f32.mxu0 %vm277_vm0, %v6204_v23  ;;  %5433 = vmatpush3.bf16.msra.mxu0 %v5430_v16  ;;  %v6354_v16 = vld [vmem:[%s5979_s27 + $0xe2] sm:$0xff]  ;;  %7184 = vst [vmem:[#allocation40_spill] sm:$0xff] %v6515_v22 }
  0x4f   : > { %5435 = vmatprep.subr.bf16.mxu0 %v5434_v24 }
  0x50   : > { %4801 = vmatmul.mubr.msk.f32.gmra.mrb[20].mxu1 %vm277_vm0, %v6219_v28  ;;  %v6501_v28 = vld [vmem:[%s5979_s27 + $0x182] sm:$0xff] }
  0x51   : > { %5097 = vmatmul.mubr.msk.f32.gmra.mrb[4].mxu0 %vm277_vm0, %v6224_v29  ;;  %4803 = vmatprep.mubr.msk.f32.mxu1 %vm277_vm0, %v6227_v30  ;;  %v6498_v30 = vld [vmem:[%s5979_s27 + $0xa8] sm:$0xff]  ;;  %7182 = vst [vmem:[#allocation38_spill] sm:$0xff] %v6501_v28 }
  0x52   : > { %5099 = vmatprep.mubr.msk.f32.mxu0 %vm277_vm0, %v6230_v31  ;;  %5437 = vmatpush3.bf16.msra.mxu0 %v5434_v24  ;;  %v5366_v24 = vpack.c.bf16 %v3919_v10, %v3918_v63  ;;  %v5370_v63 = vpack.c.bf16 %v3921_v27, %v3920_v26  ;;  %v3923_v10 = vld [vmem:[%s7098_s1 + $0xb8] sm:$0xff]  ;;  %v6409_v27 = vld [vmem:[%s5979_s27 + $0x48] sm:$0xff]  ;;  %7181 = vst [vmem:[#allocation37_spill] sm:$0xff] %v6498_v30 }
  0x53   : > { %5439 = vmatprep.subr.bf16.mxu0 %v5438_v32  ;;  %v6406_v26 = vld [vmem:[%s5979_s27 + $0x112] sm:$0xff]  ;;  %7171 = vst [vmem:[#allocation27_spill] sm:$0xff] %v6409_v27 }
  0x54   : > { %4804 = vmatmul.mubr.msk.f32.gmra.mrb[22].mxu1 %vm277_vm0, %v6245_v35  ;;  %v6490_v35 = vld [vmem:[%s5979_s27 + $0x98] sm:$0xff] }
  0x55   : > { %5100 = vmatmul.mubr.msk.f32.gmra.mrb[6].mxu0 %vm277_vm0, %v6250_v36  ;;  %4806 = vmatprep.mubr.msk.f32.mxu1 %vm277_vm0, %v6253_v37  ;;  %v6481_v37 = vld [vmem:[%s5979_s27 + $0x16a] sm:$0xff]  ;;  %7179 = vst [vmem:[#allocation35_spill] sm:$0xff] %v6490_v35 }
  0x56   : > { %5102 = vmatprep.mubr.msk.f32.mxu0 %vm277_vm0, %v6256_v38  ;;  %5441 = vmatpush3.bf16.msra.mxu0 %v5438_v32  ;;  %v6373_v32 = vld [vmem:[%s5979_s27 + $0x20] sm:$0xff]  ;;  %7178 = vst [vmem:[#allocation34_spill] sm:$0xff] %v6481_v37 }
  0x57   : > { %5443 = vmatprep.subr.bf16.mxu0 %v6258_v40  ;;  %7168 = vst [vmem:[#allocation24_spill] sm:$0xff] %v6373_v32 }
  0x58   : > { %4807 = vmatmul.mubr.msk.f32.gmra.mrb[24].mxu1 %vm277_vm0, %v6267_v41  ;;  %v6470_v41 = vld [vmem:[%s5979_s27 + $0x80] sm:$0xff] }
  0x59   : > { %5103 = vmatmul.mubr.msk.f32.gmra.mrb[8].mxu0 %vm277_vm0, %v6272_v42  ;;  %4809 = vmatprep.mubr.msk.f32.mxu1 %vm277_vm0, %v6275_v43  ;;  %v6449_v43 = vld [vmem:[%s5979_s27 + $0x68] sm:$0xff]  ;;  %7175 = vst [vmem:[#allocation31_spill] sm:$0xff] %v6470_v41 }
  0x5a   : > { %5105 = vmatprep.mubr.msk.f32.mxu0 %vm277_vm0, %v6278_v44  ;;  %7173 = vst [vmem:[#allocation29_spill] sm:$0xff] %v6449_v43 }
  0x5c   : > { %4810 = vmatmul.mubr.msk.f32.gmra.mrb[26].mxu1 %vm277_vm0, %v6288_v47  ;;  %v6438_v47 = vld [vmem:[%s5979_s27 + $0x13a] sm:$0xff] }
  0x5d   : > { %5106 = vmatmul.mubr.msk.f32.gmra.mrb[10].mxu0 %vm277_vm0, %v6293_v48  ;;  %4812 = vmatprep.mubr.msk.f32.mxu1 %vm277_vm0, %v6296_v49  ;;  %v3989_v49 = vld [vmem:[%s7098_s1 + $0xc8] sm:$0xff] }
  0x5e   : > { %5108 = vmatprep.mubr.msk.f32.mxu0 %vm277_vm0, %v6299_v50 }
  0x60   : > { %4813 = vmatmul.mubr.msk.f32.gmra.mrb[28].mxu1 %vm277_vm0, %v6308_v51  ;;  %v3988_v51 = vld [vmem:[%s7098_s1 + $0xc0] sm:$0xff] }
  0x61   : > { %5109 = vmatmul.mubr.msk.f32.gmra.mrb[12].mxu0 %vm277_vm0, %v6313_v52  ;;  %4815 = vmatprep.mubr.msk.f32.mxu1 %vm277_vm0, %v6316_v55  ;;  %v6440_v25 = vpack.c.bf16 %v3989_v49, %v3988_v51  ;;  %v6457_v49 = vld [vmem:[%s5979_s27 + $0x78] sm:$0xff] }
  0x62   : > { %5111 = vmatprep.mubr.msk.f32.mxu0 %vm277_vm0, %v6319_v56  ;;  %7174 = vst [vmem:[#allocation30_spill] sm:$0xff] %v6457_v49  ;;  %v6460_v51 = vld [vmem:[%s5979_s27 + $0x152] sm:$0xff] }
  0x64   : > { %4816 = vmatmul.mubr.msk.f32.gmra.mrb[30].mxu1 %vm277_vm0, %v6328_v57  ;;  %v6412_v57 = vld [vmem:[%s5979_s27 + $0x122] sm:$0xff] }
  0x65   : > { %5112 = vmatmul.mubr.msk.f32.gmra.mrb[14].mxu0 %vm277_vm0, %v6333_v58  ;;  %4834 = vmatprep.mubr.msk.f32.mxu1 %vm277_vm0, %v196_v60  ;;  %v6386_v60 = vld [vmem:[%s5979_s27 + $0x10a] sm:$0xff] }
  0x66   : > { %5114 = vmatprep.mubr.msk.f32.mxu0 %vm277_vm0, %v6337_v61 }
  0x68   : > { %4835 = vmatmul.mubr.msk.f32.vlgmr.msra.gmra.mrb[0].mxu1 %vm277_vm0, %v197_v11  ;;  %v6401_v11 = vld [vmem:[%s5979_s27 + $0x38] sm:$0xff] }
  0x69   : > { %5115 = vmatmul.mubr.msk.f32.gmra.mrb[16].mxu0 %vm277_vm0, %v6354_v16  ;;  %5365 = vmatpush3.bf16.msra.mxu1 %v6100_v0  ;;  %v3922_v0 = vld [vmem:[%s7098_s1 + $0xb0] sm:$0xff]  ;;  %7170 = vst [vmem:[#allocation26_spill] sm:$0xff] %v6401_v11 }
  0x6a   : > { %4837 = vmatprep.mubr.msk.f32.mxu1 %vm277_vm0, %v6357_v18  ;;  %5117 = vmatprep.mubr.msk.f32.mxu0 %vm277_vm0, %v6360_v19  ;;  %v5374_v55 = vpack.c.bf16 %v3923_v10, %v3922_v0  ;;  %v6432_v0 = vld [vmem:[%s5979_s27 + $0x12a] sm:$0xff]  ;;  %v6435_v10 = vld [vmem:[%s5979_s27 + $0x60] sm:$0xff] }
  0x6b   : > { %5367 = vmatprep.subr.bf16.mxu1 %v5366_v24  ;;  %v6518_v18 = vld [vmem:[%s5979_s27 + $0xc0] sm:$0xff] }
  0x6c   : > { %4838 = vmatmul.mubr.msk.f32.gmra.mrb[2].mxu1 %vm277_vm0, %v6373_v32  ;;  %v6510_v32 = vld [vmem:[%s5979_s27 + $0xb0] sm:$0xff]  ;;  %7185 = vst [vmem:[#allocation41_spill] sm:$0xff] %v6518_v18 }
  0x6d   : > { %5118 = vmatmul.mubr.msk.f32.gmra.mrb[18].mxu0 %vm277_vm0, %v6380_v33  ;;  %4840 = vmatprep.mubr.msk.f32.mxu1 %vm277_vm0, %v6383_v34  ;;  %7183 = vst [vmem:[#allocation39_spill] sm:$0xff] %v6510_v32 }
  0x6e   : > { %5120 = vmatprep.mubr.msk.f32.mxu0 %vm277_vm0, %v6386_v60  ;;  %5369 = vmatpush3.bf16.msra.mxu1 %v5366_v24  ;;  %v6427_v24 = vld [vmem:[%s5979_s27 + $0x50] sm:$0xff] }
  0x6f   : > { %5371 = vmatprep.subr.bf16.mxu1 %v5370_v63  ;;  %7172 = vst [vmem:[#allocation28_spill] sm:$0xff] %v6427_v24 }
  0x70   : > { %4841 = vmatmul.mubr.msk.f32.gmra.mrb[4].mxu1 %vm277_vm0, %v6401_v11 }
  0x71   : > { %5121 = vmatmul.mubr.msk.f32.gmra.mrb[20].mxu0 %vm277_vm0, %v6406_v26  ;;  %4843 = vmatprep.mubr.msk.f32.mxu1 %vm277_vm0, %v6409_v27 }
  0x72   : > { %5123 = vmatprep.mubr.msk.f32.mxu0 %vm277_vm0, %v6412_v57  ;;  %5373 = vmatpush3.bf16.msra.mxu1 %v5370_v63  ;;  %v6454_v63 = vld [vmem:[%s5979_s27 + $0x142] sm:$0xff] }
  0x73   : > { %5375 = vmatprep.subr.bf16.mxu1 %v5374_v55 }
  0x74   : > { %4844 = vmatmul.mubr.msk.f32.gmra.mrb[6].mxu1 %vm277_vm0, %v6427_v24 }
  0x75   : > { %5124 = vmatmul.mubr.msk.f32.gmra.mrb[22].mxu0 %vm277_vm0, %v6432_v0  ;;  %4846 = vmatprep.mubr.msk.f32.mxu1 %vm277_vm0, %v6435_v10 }
  0x76   : > { %5126 = vmatprep.mubr.msk.f32.mxu0 %vm277_vm0, %v6438_v47  ;;  %5377 = vmatpush3.bf16.msra.mxu1 %v5374_v55  ;;  %v6475_v55 = vld [vmem:[%s5979_s27 + $0x15a] sm:$0xff] }
  0x77   : > { %5379 = vmatprep.subr.bf16.mxu1 %v6440_v25  ;;  %7176 = vst [vmem:[#allocation32_spill] sm:$0xff] %v6475_v55 }
  0x78   : > { %4847 = vmatmul.mubr.msk.f32.gmra.mrb[8].mxu1 %vm277_vm0, %v6449_v43 }
  0x79   : > { %5127 = vmatmul.mubr.msk.f32.gmra.mrb[24].mxu0 %vm277_vm0, %v6454_v63  ;;  %4849 = vmatprep.mubr.msk.f32.mxu1 %vm277_vm0, %v6457_v49 }
  0x7a   : > { %5129 = vmatprep.mubr.msk.f32.mxu0 %vm277_vm0, %v6460_v51 }
  0x7c   : > { %4850 = vmatmul.mubr.msk.f32.gmra.mrb[10].mxu1 %vm277_vm0, %v6470_v41 }
  0x7d   : > { %5130 = vmatmul.mubr.msk.f32.gmra.mrb[26].mxu0 %vm277_vm0, %v6475_v55  ;;  %4852 = vmatprep.mubr.msk.f32.mxu1 %vm277_vm0, %v6478_v17  ;;  %v4283_v55 = vld [vmem:[%s7098_s1 + $0x1f8] sm:$0xff] }
  0x7e   : > { %5132 = vmatprep.mubr.msk.f32.mxu0 %vm277_vm0, %v6481_v37 }
  0x80   : > { %4853 = vmatmul.mubr.msk.f32.gmra.mrb[12].mxu1 %vm277_vm0, %v6490_v35 }
  0x81   : > { %5133 = vmatmul.mubr.msk.f32.gmra.mrb[28].mxu0 %vm277_vm0, %v6495_v12  ;;  %4855 = vmatprep.mubr.msk.f32.mxu1 %vm277_vm0, %v6498_v30  ;;  %v4279_v12 = vld [vmem:[%s7098_s1 + $0x1d8] sm:$0xff] }
  0x82   : > { %5135 = vmatprep.mubr.msk.f32.mxu0 %vm277_vm0, %v6501_v28  ;;  %v6533_v28 = vld [vmem:[%s5979_s27 + $0xc8] sm:$0xff]  ;;  %v5446_v37 = vpack.c.bf16 %v4279_v12, %v4278_v20  ;;  %v6553_v12 = vld [vmem:[%s5979_s27 + $0xe0] sm:$0xff]  ;;  %v6559_v20 = vld [vmem:[%s5979_s27 + $0xf0] sm:$0xff] }
  0x83   : > { %7186 = vst [vmem:[#allocation42_spill] sm:$0xff] %v6533_v28 }
  0x84   : > { %4856 = vmatmul.mubr.msk.f32.gmra.mrb[14].mxu1 %vm277_vm0, %v6510_v32 }
  0x85   : > { %5136 = vmatmul.mubr.msk.f32.gmra.mrb[30].mxu0 %vm277_vm0, %v6515_v22  ;;  %4858 = vmatprep.mubr.msk.f32.mxu1 %vm277_vm0, %v6518_v18  ;;  %v4281_v22 = vld [vmem:[%s7098_s1 + $0x1e8] sm:$0xff] }
  0x86   : > { %5154 = vmatprep.mubr.msk.f32.mxu0 %vm277_vm0, %v6383_v34  ;;  %v5450_v34 = vpack.c.bf16 %v4281_v22, %v4280_v8  ;;  %v6574_v8 = vld [vmem:[%s5979_s27 + $0xf8] sm:$0xff]  ;;  %v6579_v22 = vld [vmem:[%s5979_s27 + $0x108] sm:$0xff] }
  0x88   : > { %4859 = vmatmul.mubr.msk.f32.gmra.mrb[16].mxu1 %vm277_vm0, %v6533_v28 }
  0x89   : > { %5155 = vmatmul.mubr.msk.f32.vlgmr.msra.gmra.mrb[0].mxu0 %vm277_vm0, %v6401_v11  ;;  %4861 = vmatprep.mubr.msk.f32.mxu1 %vm277_vm0, %v6538_v14  ;;  %v4282_v11 = vld [vmem:[%s7098_s1 + $0x1f0] sm:$0xff] }
  0x8a   : > { %5445 = vmatpush3.bf16.msra.mxu0 %v6258_v40  ;;  %5157 = vmatprep.mubr.msk.f32.mxu0 %vm277_vm0, %v6409_v27  ;;  %v5454_v40 = vpack.c.bf16 %v4283_v55, %v4282_v11  ;;  %v4349_v27 = vld [vmem:[%s7098_s1 + $0x208] sm:$0xff]  ;;  %v6599_v11 = vld [vmem:[%s5979_s27 + $0x120] sm:$0xff] }
  0x8b   : > { %5447 = vmatprep.subr.bf16.mxu0 %v5446_v37 }
  0x8c   : > { %4862 = vmatmul.mubr.msk.f32.gmra.mrb[18].mxu1 %vm277_vm0, %v6553_v12 }
  0x8d   : > { %5158 = vmatmul.mubr.msk.f32.gmra.mrb[2].mxu0 %vm277_vm0, %v6427_v24  ;;  %4864 = vmatprep.mubr.msk.f32.mxu1 %vm277_vm0, %v6559_v20  ;;  %v4348_v24 = vld [vmem:[%s7098_s1 + $0x200] sm:$0xff] }
  0x8e   : > { %5160 = vmatprep.mubr.msk.f32.mxu0 %vm277_vm0, %v6435_v10  ;;  %5449 = vmatpush3.bf16.msra.mxu0 %v5446_v37  ;;  %v6594_v37 = vld [vmem:[%s5979_s27 + $0x110] sm:$0xff]  ;;  %v6601_v55 = vpack.c.bf16 %v4349_v27, %v4348_v24  ;;  %v6625_v27 = vld [vmem:[%s5979_s27 + $0x140] sm:$0xff] }
  0x8f   : > { %5451 = vmatprep.subr.bf16.mxu0 %v5450_v34  ;;  %v6630_v24 = vld [vmem:[%s5979_s27 + $0x150] sm:$0xff] }
  0x90   : > { %4865 = vmatmul.mubr.msk.f32.gmra.mrb[20].mxu1 %vm277_vm0, %v6574_v8 }
  0x91   : > { %5161 = vmatmul.mubr.msk.f32.gmra.mrb[4].mxu0 %vm277_vm0, %v6449_v43  ;;  %4867 = vmatprep.mubr.msk.f32.mxu1 %vm277_vm0, %v6579_v22  ;;  %v6610_v43 = vld [vmem:[%s5979_s27 + $0x128] sm:$0xff] }
  0x92   : > { %5163 = vmatprep.mubr.msk.f32.mxu0 %vm277_vm0, %v6457_v49  ;;  %5453 = vmatpush3.bf16.msra.mxu0 %v5450_v34  ;;  %v6615_v34 = vld [vmem:[%s5979_s27 + $0x138] sm:$0xff]  ;;  %v3993_v49 = vld [vmem:[%s7098_s1 + $0xe8] sm:$0xff] }
  0x93   : > { %5455 = vmatprep.subr.bf16.mxu0 %v5454_v40 }
  0x94   : > { %4868 = vmatmul.mubr.msk.f32.gmra.mrb[22].mxu1 %vm277_vm0, %v6594_v37 }
  0x95   : > { %5164 = vmatmul.mubr.msk.f32.gmra.mrb[6].mxu0 %vm277_vm0, %v6470_v41  ;;  %4870 = vmatprep.mubr.msk.f32.mxu1 %vm277_vm0, %v6599_v11  ;;  %v3992_v41 = vld [vmem:[%s7098_s1 + $0xe0] sm:$0xff] }
  0x96   : > { %5166 = vmatprep.mubr.msk.f32.mxu0 %vm277_vm0, %v6478_v17  ;;  %5457 = vmatpush3.bf16.msra.mxu0 %v5454_v40  ;;  %v6639_v40 = vld [vmem:[%s5979_s27 + $0x158] sm:$0xff]  ;;  %v921_v17 = vld [vmem:[%s5979_s27 + $0xa] sm:$0xff] }
  0x97   : > { %5459 = vmatprep.subr.bf16.mxu0 %v6601_v55 }
  0x98   : > { %4871 = vmatmul.mubr.msk.f32.gmra.mrb[24].mxu1 %vm277_vm0, %v6610_v43 }
  0x99   : > { %5167 = vmatmul.mubr.msk.f32.gmra.mrb[8].mxu0 %vm277_vm0, %v6490_v35  ;;  %4873 = vmatprep.mubr.msk.f32.mxu1 %vm277_vm0, %v6615_v34  ;;  %v6644_v35 = vld [vmem:[%s5979_s27 + $0x168] sm:$0xff] }
  0x9a   : > { %5169 = vmatprep.mubr.msk.f32.mxu0 %vm277_vm0, %v6498_v30  ;;  %v920_v30 = vld [vmem:[%s5979_s27 + $0x2] sm:$0xff] }
  0x9c   : > { %4874 = vmatmul.mubr.msk.f32.gmra.mrb[26].mxu1 %vm277_vm0, %v6625_v27 }
  0x9d   : > { %5170 = vmatmul.mubr.msk.f32.gmra.mrb[10].mxu0 %vm277_vm0, %v6510_v32  ;;  %4876 = vmatprep.mubr.msk.f32.mxu1 %vm277_vm0, %v6630_v24  ;;  %v6653_v32 = vld [vmem:[%s5979_s27 + $0x170] sm:$0xff] }
  0x9e   : > { %5172 = vmatprep.mubr.msk.f32.mxu0 %vm277_vm0, %v6518_v18  ;;  %v3990_v18 = vld [vmem:[%s7098_s1 + $0xd0] sm:$0xff] }
  0xa0   : > { %4877 = vmatmul.mubr.msk.f32.gmra.mrb[28].mxu1 %vm277_vm0, %v6639_v40 }
  0xa1   : > { %5173 = vmatmul.mubr.msk.f32.gmra.mrb[12].mxu0 %vm277_vm0, %v6533_v28  ;;  %4879 = vmatprep.mubr.msk.f32.mxu1 %vm277_vm0, %v6644_v35  ;;  %v3991_v28 = vld [vmem:[%s7098_s1 + $0xd8] sm:$0xff] }
  0xa2   : > { %5175 = vmatprep.mubr.msk.f32.mxu0 %vm277_vm0, %v6538_v14  ;;  %v5382_v14 = vpack.c.bf16 %v3991_v28, %v3990_v18  ;;  %v3994_v28 = vld [vmem:[%s7098_s1 + $0xf0] sm:$0xff] }
  0xa3   : > { %v4350_v18 = vld [vmem:[%s7098_s1 + $0x210] sm:$0xff] }
  0xa4   : > { %4880 = vmatmul.mubr.msk.f32.gmra.mrb[30].mxu1 %vm277_vm0, %v6653_v32 }
  0xa5   : > { %5176 = vmatmul.mubr.msk.f32.gmra.mrb[14].mxu0 %vm277_vm0, %v6553_v12  ;;  %4898 = vmatprep.mubr.msk.f32.mxu1 %vm277_vm0, %v920_v30  ;;  %v3995_v30 = vld [vmem:[%s7098_s1 + $0xf8] sm:$0xff] }
  0xa6   : > { %5178 = vmatprep.mubr.msk.f32.mxu0 %vm277_vm0, %v6559_v20 }
  0xa8   : > { %4899 = vmatmul.mubr.msk.f32.vlgmr.msra.gmra.mrb[0].mxu1 %vm277_vm0, %v921_v17  ;;  %v5386_v17 = vpack.c.bf16 %v3993_v49, %v3992_v41  ;;  %v4203_v41 = vld [vmem:[%s5979_s27 + $0x1a0] sm:$0xff]  ;;  %v4351_v49 = vld [vmem:[%s7098_s1 + $0x218] sm:$0xff] }
  0xa9   : > { %5179 = vmatmul.mubr.msk.f32.gmra.mrb[16].mxu0 %vm277_vm0, %v6574_v8  ;;  %5381 = vmatpush3.bf16.msra.mxu1 %v6440_v25  ;;  %v5390_v25 = vpack.c.bf16 %v3995_v30, %v3994_v28  ;;  %v4352_v28 = vld [vmem:[%s7098_s1 + $0x220] sm:$0xff]  ;;  %v4353_v30 = vld [vmem:[%s7098_s1 + $0x228] sm:$0xff] }
  0xaa   : > { %4901 = vmatprep.mubr.msk.f32.mxu1 %vm277_vm0, %v6155_v9  ;;  %5181 = vmatprep.mubr.msk.f32.mxu0 %vm277_vm0, %v6579_v22  ;;  %v6726_v9 = vld [vmem:[%s5979_s27 + $0x180] sm:$0xff] }
  0xab   : > { %5383 = vmatprep.subr.bf16.mxu1 %v5382_v14 }
  0xac   : > { %4902 = vmatmul.mubr.msk.f32.gmra.mrb[2].mxu1 %vm277_vm0, %v6172_v13  ;;  %v6737_v13 = vld [vmem:[%s5979_s27 + $0x188] sm:$0xff] }
  0xad   : > { %5182 = vmatmul.mubr.msk.f32.gmra.mrb[18].mxu0 %vm277_vm0, %v6594_v37  ;;  %4904 = vmatprep.mubr.msk.f32.mxu1 %vm277_vm0, %v6178_v15 }
  0xae   : > { %5184 = vmatprep.mubr.msk.f32.mxu0 %vm277_vm0, %v6599_v11  ;;  %5385 = vmatpush3.bf16.msra.mxu1 %v5382_v14  ;;  %v4202_v14 = vld [vmem:[%s5979_s27 + $0x198] sm:$0xff] }
  0xaf   : > { %5387 = vmatprep.subr.bf16.mxu1 %v5386_v17 }
  0xb0   : > { %4905 = vmatmul.mubr.msk.f32.gmra.mrb[4].mxu1 %vm277_vm0, %v6198_v21 }
  0xb1   : > { %5185 = vmatmul.mubr.msk.f32.gmra.mrb[20].mxu0 %vm277_vm0, %v6610_v43  ;;  %4907 = vmatprep.mubr.msk.f32.mxu1 %vm277_vm0, %v6204_v23 }
  0xb2   : > { %5187 = vmatprep.mubr.msk.f32.mxu0 %vm277_vm0, %v6615_v34  ;;  %5389 = vmatpush3.bf16.msra.mxu1 %v5386_v17  ;;  %v5462_v17 = vpack.c.bf16 %v4351_v49, %v4350_v18  ;;  %v7201_v18 = vld [vmem:[#allocation26_spill] sm:$0xff] }
  0xb3   : > { %5391 = vmatprep.subr.bf16.mxu1 %v5390_v25  ;;  %v7202_v49 = vld [vmem:[#allocation14_spill] sm:$0xff] }
  0xb4   : > { %4908 = vmatmul.mubr.msk.f32.gmra.mrb[6].mxu1 %vm277_vm0, %v6224_v29 }
  0xb5   : > { %5188 = vmatmul.mubr.msk.f32.gmra.mrb[22].mxu0 %vm277_vm0, %v6625_v27  ;;  %4910 = vmatprep.mubr.msk.f32.mxu1 %vm277_vm0, %v6230_v31 }
  0xb6   : > { %5190 = vmatprep.mubr.msk.f32.mxu0 %vm277_vm0, %v6630_v24  ;;  %5393 = vmatpush3.bf16.msra.mxu1 %v5390_v25  ;;  %v4354_v25 = vld [vmem:[%s7098_s1 + $0x230] sm:$0xff] }
  0xb7   : > { %5474 = vmatprep.subr.bf16.mxu1 %v5939_v7 }
  0xb8   : > { %4911 = vmatmul.mubr.msk.f32.gmra.mrb[8].mxu1 %vm277_vm0, %v6250_v36 }
  0xb9   : > { %5191 = vmatmul.mubr.msk.f32.gmra.mrb[24].mxu0 %vm277_vm0, %v6639_v40  ;;  %4913 = vmatprep.mubr.msk.f32.mxu1 %vm277_vm0, %v6256_v38 }
  0xba   : > { %5193 = vmatprep.mubr.msk.f32.mxu0 %vm277_vm0, %v6644_v35 }
  0xbc   : > { %4914 = vmatmul.mubr.msk.f32.gmra.mrb[10].mxu1 %vm277_vm0, %v6272_v42 }
  0xbd   : > { %5194 = vmatmul.mubr.msk.f32.gmra.mrb[26].mxu0 %vm277_vm0, %v6653_v32  ;;  %4916 = vmatprep.mubr.msk.f32.mxu1 %vm277_vm0, %v6278_v44 }
  0xbe   : > { %5196 = vmatprep.mubr.msk.f32.mxu0 %vm277_vm0, %v6726_v9 }
  0xc0   : > { %4917 = vmatmul.mubr.msk.f32.gmra.mrb[12].mxu1 %vm277_vm0, %v6293_v48 }
  0xc1   : > { %5197 = vmatmul.mubr.msk.f32.gmra.mrb[28].mxu0 %vm277_vm0, %v6737_v13  ;;  %4919 = vmatprep.mubr.msk.f32.mxu1 %vm277_vm0, %v6299_v50 }
  0xc2   : > { %5199 = vmatprep.mubr.msk.f32.mxu0 %vm277_vm0, %v4202_v14  ;;  %v7199_v14 = vld [vmem:[#allocation13_spill] sm:$0xff] }
  0xc4   : > { %4920 = vmatmul.mubr.msk.f32.gmra.mrb[14].mxu1 %vm277_vm0, %v6313_v52 }
  0xc5   : > { %5200 = vmatmul.mubr.msk.f32.gmra.mrb[30].mxu0 %vm277_vm0, %v4203_v41  ;;  %4922 = vmatprep.mubr.msk.f32.mxu1 %vm277_vm0, %v6319_v56  ;;  %v7200_v41 = vld [vmem:[#allocation5_spill] sm:$0xff] }
  0xc6   : > { %5218 = vmatprep.mubr.msk.f32.mxu0 %vm277_vm0, %v6023_v39  ;;  %v5466_v39 = vpack.c.bf16 %v4353_v30, %v4352_v28  ;;  %v7204_v28 = vld [vmem:[#allocation15_spill] sm:$0xff]  ;;  %v7206_v30 = vld [vmem:[#allocation28_spill] sm:$0xff] }
  0xc8   : > { %4923 = vmatmul.mubr.msk.f32.gmra.mrb[16].mxu1 %vm277_vm0, %v6333_v58 }
  0xc9   : > { %5219 = vmatmul.mubr.msk.f32.vlgmr.msra.gmra.mrb[0].mxu0 %vm277_vm0, %v6040_v45  ;;  %4925 = vmatprep.mubr.msk.f32.mxu1 %vm277_vm0, %v6337_v61  ;;  %v4355_v45 = vld [vmem:[%s7098_s1 + $0x238] sm:$0xff] }
  0xca   : > { %5461 = vmatpush3.bf16.msra.mxu0 %v6601_v55  ;;  %5221 = vmatprep.mubr.msk.f32.mxu0 %vm277_vm0, %v6045_v46  ;;  %v5470_v46 = vpack.c.bf16 %v4355_v45, %v4354_v25  ;;  %v7198_v55 = vld [vmem:[#allocation25_spill] sm:$0xff]  ;;  %v7209_v45 = vld [vmem:[#allocation7_spill] sm:$0xff] }
  0xcb   : > { %5463 = vmatprep.subr.bf16.mxu0 %v5462_v17  ;;  %v7208_v25 = vld [vmem:[#allocation17_spill] sm:$0xff] }
  0xcc   : > { %4926 = vmatmul.mubr.msk.f32.gmra.mrb[18].mxu1 %vm277_vm0, %v6354_v16 }
  0xcd   : > { %5222 = vmatmul.mubr.msk.f32.gmra.mrb[2].mxu0 %vm277_vm0, %v6067_v53  ;;  %4928 = vmatprep.mubr.msk.f32.mxu1 %vm277_vm0, %v6360_v19  ;;  %v7188_v53 = vld [vmem:[#allocation32_spill] sm:$0xff] }
  0xce   : > { %5224 = vmatprep.mubr.msk.f32.mxu0 %vm277_vm0, %v6070_v54  ;;  %5465 = vmatpush3.bf16.msra.mxu0 %v5462_v17  ;;  %v7189_v54 = vld [vmem:[#allocation8_spill] sm:$0xff]  ;;  %v7203_v17 = vld [vmem:[#allocation27_spill] sm:$0xff] }
  0xcf   : > { %5467 = vmatprep.subr.bf16.mxu0 %v5466_v39 }
  0xd0   : > { %4929 = vmatmul.mubr.msk.f32.gmra.mrb[20].mxu1 %vm277_vm0, %v6380_v33 }
  0xd1   : > { %5225 = vmatmul.mubr.msk.f32.gmra.mrb[4].mxu0 %vm277_vm0, %v6087_v59  ;;  %4931 = vmatprep.mubr.msk.f32.mxu1 %vm277_vm0, %v6386_v60  ;;  %v7190_v59 = vld [vmem:[#allocation34_spill] sm:$0xff] }
  0xd2   : > { %5227 = vmatprep.mubr.msk.f32.mxu0 %vm277_vm0, %v6096_v62  ;;  %5469 = vmatpush3.bf16.msra.mxu0 %v5466_v39  ;;  %v7191_v62 = vld [vmem:[#allocation9_spill] sm:$0xff]  ;;  %v7207_v39 = vld [vmem:[#allocation16_spill] sm:$0xff] }
  0xd3   : > { %5471 = vmatprep.subr.bf16.mxu0 %v5470_v46 }
  0xd4   : > { %4932 = vmatmul.mubr.msk.f32.gmra.mrb[22].mxu1 %vm277_vm0, %v6406_v26 }
  0xd5   : > { %5228 = vmatmul.mubr.msk.f32.gmra.mrb[6].mxu0 %vm277_vm0, %v6109_v1  ;;  %4934 = vmatprep.mubr.msk.f32.mxu1 %vm277_vm0, %v6412_v57  ;;  %v7192_v1 = vld [vmem:[#allocation36_spill] sm:$0xff] }
  0xd6   : > { %5230 = vmatprep.mubr.msk.f32.mxu0 %vm277_vm0, %v6112_v2  ;;  %5473 = vmatpush3.bf16.msra.mxu0 %v5470_v46  ;;  %v7193_v2 = vld [vmem:[#allocation10_spill] sm:$0xff]  ;;  %v7210_v46 = vld [vmem:[#allocation29_spill] sm:$0xff] }
  0xd8   : > { %4935 = vmatmul.mubr.msk.f32.gmra.mrb[24].mxu1 %vm277_vm0, %v6432_v0 }
  0xd9   : > { %5231 = vmatmul.mubr.msk.f32.gmra.mrb[8].mxu0 %vm277_vm0, %v6124_v3  ;;  %4937 = vmatprep.mubr.msk.f32.mxu1 %vm277_vm0, %v6438_v47  ;;  %v7194_v3 = vld [vmem:[#allocation23_spill] sm:$0xff] }
  0xda   : > { %5233 = vmatprep.mubr.msk.f32.mxu0 %vm277_vm0, %v6127_v4  ;;  %v7195_v4 = vld [vmem:[#allocation11_spill] sm:$0xff] }
  0xdc   : > { %4938 = vmatmul.mubr.msk.f32.gmra.mrb[26].mxu1 %vm277_vm0, %v6454_v63 }
  0xdd   : > { %5234 = vmatmul.mubr.msk.f32.gmra.mrb[10].mxu0 %vm277_vm0, %v6138_v5  ;;  %4940 = vmatprep.mubr.msk.f32.mxu1 %vm277_vm0, %v6460_v51  ;;  %v7196_v5 = vld [vmem:[#allocation24_spill] sm:$0xff] }
  0xde   : > { %5236 = vmatprep.mubr.msk.f32.mxu0 %vm277_vm0, %v6141_v6  ;;  %v7197_v6 = vld [vmem:[#allocation12_spill] sm:$0xff] }
  0xe0   : > { %4941 = vmatmul.mubr.msk.f32.gmra.mrb[28].mxu1 %vm277_vm0, %v7188_v53 }
  0xe1   : > { %5237 = vmatmul.mubr.msk.f32.gmra.mrb[12].mxu0 %vm277_vm0, %v7189_v54  ;;  %4943 = vmatprep.mubr.msk.f32.mxu1 %vm277_vm0, %v7190_v59  ;;  %v7211_v54 = vld [vmem:[#allocation18_spill] sm:$0xff] }
  0xe2   : > { %5239 = vmatprep.mubr.msk.f32.mxu0 %vm277_vm0, %v7191_v62  ;;  %v7212_v62 = vld [vmem:[#allocation30_spill] sm:$0xff] }
  0xe4   : > { %4944 = vmatmul.mubr.msk.f32.gmra.mrb[30].mxu1 %vm277_vm0, %v7192_v1 }
  0xe5   : > { %5240 = vmatmul.mubr.msk.f32.gmra.mrb[14].mxu0 %vm277_vm0, %v7193_v2  ;;  %4962 = vmatprep.mubr.msk.f32.mxu1 %vm277_vm0, %v7194_v3  ;;  %v7213_v2 = vld [vmem:[#allocation19_spill] sm:$0xff]  ;;  %v7215_v3 = vld [vmem:[#allocation20_spill] sm:$0xff] }
  0xe6   : > { %5242 = vmatprep.mubr.msk.f32.mxu0 %vm277_vm0, %v7195_v4  ;;  %v7216_v4 = vld [vmem:[#allocation33_spill] sm:$0xff] }
  0xe8   : > { %4963 = vmatmul.mubr.msk.f32.vlgmr.msra.gmra.mrb[0].mxu1 %vm277_vm0, %v7196_v5  ;;  %v7217_v5 = vld [vmem:[#allocation21_spill] sm:$0xff] }
  0xe9   : > { %5243 = vmatmul.mubr.msk.f32.gmra.mrb[16].mxu0 %vm277_vm0, %v7197_v6  ;;  %5478 = vmatpush3.bf16.msra.mxu1 %v5939_v7  ;;  %v7205_v7 = vld [vmem:[#allocation6_spill] sm:$0xff] }
  0xea   : > { %4965 = vmatprep.mubr.msk.f32.mxu1 %vm277_vm0, %v7198_v55  ;;  %5245 = vmatprep.mubr.msk.f32.mxu0 %vm277_vm0, %v7199_v14  ;;  %v6886_v6 = vld [vmem:[%s5979_s27 + $0x181] sm:$0xff]  ;;  %v7218_v55 = vld [vmem:[#allocation35_spill] sm:$0xff] }
  0xeb   : > { %5475 = vmatprep.subr.bf16.mxu1 %v7200_v41  ;;  %v7219_v14 = vld [vmem:[#allocation22_spill] sm:$0xff] }
  0xec   : > { %4966 = vmatmul.mubr.msk.f32.gmra.mrb[2].mxu1 %vm277_vm0, %v7201_v18  ;;  %v6897_v18 = vld [vmem:[%s5979_s27 + $0x189] sm:$0xff] }
  0xed   : > { %5246 = vmatmul.mubr.msk.f32.gmra.mrb[18].mxu0 %vm277_vm0, %v7202_v49  ;;  %4968 = vmatprep.mubr.msk.f32.mxu1 %vm277_vm0, %v7203_v17  ;;  %v4274_v49 = vld [vmem:[%s5979_s27 + $0x199] sm:$0xff]  ;;  %v7221_v17 = vld [vmem:[#allocation39_spill] sm:$0xff] }
  0xee   : > { %5248 = vmatprep.mubr.msk.f32.mxu0 %vm277_vm0, %v7204_v28  ;;  %5479 = vmatpush3.bf16.msra.mxu1 %v7200_v41  ;;  %v7220_v41 = vld [vmem:[#allocation37_spill] sm:$0xff] }
  0xef   : > { %5476 = vmatprep.subr.bf16.mxu1 %v7205_v7  ;;  %v7222_v28 = vld [vmem:[#allocation41_spill] sm:$0xff] }
  0xf0   : > { %4969 = vmatmul.mubr.msk.f32.gmra.mrb[4].mxu1 %vm277_vm0, %v7206_v30  ;;  %v7223_v30 = vld [vmem:[#allocation42_spill] sm:$0xff] }
  0xf1   : > { %5249 = vmatmul.mubr.msk.f32.gmra.mrb[20].mxu0 %vm277_vm0, %v7207_v39  ;;  %4971 = vmatprep.mubr.msk.f32.mxu1 %vm277_vm0, %v6435_v10  ;;  %v7214_v10 = vld [vmem:[#allocation31_spill] sm:$0xff] }
  0xf2   : > { %5251 = vmatprep.mubr.msk.f32.mxu0 %vm277_vm0, %v7208_v25  ;;  %5480 = vmatpush3.bf16.msra.mxu1 %v7205_v7  ;;  %v4275_v7 = vld [vmem:[%s5979_s27 + $0x1a1] sm:$0xff]  ;;  %v7224_v39 = vld [vmem:[#allocation43_spill] sm:$0xff] }
  0xf3   : > { %5477 = vmatprep.subr.bf16.mxu1 %v7209_v45 }
  0xf4   : > { %4972 = vmatmul.mubr.msk.f32.gmra.mrb[6].mxu1 %vm277_vm0, %v7210_v46 }
  0xf5   : > { %5252 = vmatmul.mubr.msk.f32.gmra.mrb[22].mxu0 %vm277_vm0, %v7211_v54  ;;  %4974 = vmatprep.mubr.msk.f32.mxu1 %vm277_vm0, %v7212_v62 }
  0xf6   : > { %5254 = vmatprep.mubr.msk.f32.mxu0 %vm277_vm0, %v7213_v2  ;;  %5481 = vmatpush3.bf16.msra.mxu1 %v7209_v45 }
  0xf8   : > { %4975 = vmatmul.mubr.msk.f32.gmra.mrb[8].mxu1 %vm277_vm0, %v7214_v10 }
  0xf9   : > { %5255 = vmatmul.mubr.msk.f32.gmra.mrb[24].mxu0 %vm277_vm0, %v7215_v3  ;;  %4977 = vmatprep.mubr.msk.f32.mxu1 %vm277_vm0, %v7216_v4 }
  0xfa   : > { %5257 = vmatprep.mubr.msk.f32.mxu0 %vm277_vm0, %v7217_v5 }
  0xfc   : > { %4978 = vmatmul.mubr.msk.f32.gmra.mrb[10].mxu1 %vm277_vm0, %v7218_v55 }
  0xfd   : > { %5258 = vmatmul.mubr.msk.f32.gmra.mrb[26].mxu0 %vm277_vm0, %v7219_v14  ;;  %4980 = vmatprep.mubr.msk.f32.mxu1 %vm277_vm0, %v7220_v41 }
  0xfe   : > { %5260 = vmatprep.mubr.msk.f32.mxu0 %vm277_vm0, %v6886_v6 }
 0x100   : > { %4981 = vmatmul.mubr.msk.f32.gmra.mrb[12].mxu1 %vm277_vm0, %v7221_v17 }
 0x101   : > { %5261 = vmatmul.mubr.msk.f32.gmra.mrb[28].mxu0 %vm277_vm0, %v6897_v18  ;;  %4983 = vmatprep.mubr.msk.f32.mxu1 %vm277_vm0, %v7222_v28 }
 0x102   : > { %5263 = vmatprep.mubr.msk.f32.mxu0 %vm277_vm0, %v4274_v49 }
 0x104   : > { %4984 = vmatmul.mubr.msk.f32.gmra.mrb[14].mxu1 %vm277_vm0, %v7223_v30 }
 0x105   : > { %5264 = vmatmul.mubr.msk.f32.gmra.mrb[30].mxu0 %vm277_vm0, %v4275_v7  ;;  %4986 = vmatprep.mubr.msk.f32.mxu1 %vm277_vm0, %v7224_v39 }
 0x106   : > { %5282 = vmatprep.mubr.msk.f32.mxu0 %vm277_vm0, %v6178_v15  ;;  %v4044_v15 = vld [vmem:[%s5979_s27 + $0xd9] sm:$0xff] }
 0x108   : > { %4987 = vmatmul.mubr.msk.f32.gmra.mrb[16].mxu1 %vm277_vm0, %v6553_v12 }
 0x109   : > { %5283 = vmatmul.mubr.msk.f32.vlgmr.msra.gmra.mrb[0].mxu0 %vm277_vm0, %v6198_v21  ;;  %4989 = vmatprep.mubr.msk.f32.mxu1 %vm277_vm0, %v6559_v20  ;;  %v4045_v21 = vld [vmem:[%s5979_s27 + $0xe1] sm:$0xff] }
 0x10a   : > { %5285 = vmatprep.mubr.msk.f32.mxu0 %vm277_vm0, %v6204_v23  ;;  %v4046_v23 = vld [vmem:[%s5979_s27 + $0xf1] sm:$0xff] }
 0x10c   : > { %4990 = vmatmul.mubr.msk.f32.gmra.mrb[18].mxu1 %vm277_vm0, %v6574_v8 }
 0x10d   : > { %5286 = vmatmul.mubr.msk.f32.gmra.mrb[2].mxu0 %vm277_vm0, %v6224_v29  ;;  %4992 = vmatprep.mubr.msk.f32.mxu1 %vm277_vm0, %v6579_v22  ;;  %v4047_v29 = vld [vmem:[%s5979_s27 + $0xf9] sm:$0xff] }
 0x10e   : > { %5288 = vmatprep.mubr.msk.f32.mxu0 %vm277_vm0, %v6230_v31  ;;  %v4048_v31 = vld [vmem:[%s5979_s27 + $0x109] sm:$0xff] }
 0x110   : > { %4993 = vmatmul.mubr.msk.f32.gmra.mrb[20].mxu1 %vm277_vm0, %v6594_v37 }
 0x111   : > { %5289 = vmatmul.mubr.msk.f32.gmra.mrb[4].mxu0 %vm277_vm0, %v6250_v36  ;;  %4995 = vmatprep.mubr.msk.f32.mxu1 %vm277_vm0, %v6599_v11  ;;  %v4050_v36 = vld [vmem:[%s5979_s27 + $0x121] sm:$0xff] }
 0x112   : > { %5291 = vmatprep.mubr.msk.f32.mxu0 %vm277_vm0, %v6256_v38  ;;  %v4051_v38 = vld [vmem:[%s5979_s27 + $0x129] sm:$0xff] }
 0x114   : > { %4996 = vmatmul.mubr.msk.f32.gmra.mrb[22].mxu1 %vm277_vm0, %v6610_v43  ;;  %v4053_v43 = vld [vmem:[%s5979_s27 + $0x141] sm:$0xff] }
 0x115   : > { %5292 = vmatmul.mubr.msk.f32.gmra.mrb[6].mxu0 %vm277_vm0, %v6272_v42  ;;  %4998 = vmatprep.mubr.msk.f32.mxu1 %vm277_vm0, %v6615_v34  ;;  %v4052_v42 = vld [vmem:[%s5979_s27 + $0x139] sm:$0xff] }
 0x116   : > { %5294 = vmatprep.mubr.msk.f32.mxu0 %vm277_vm0, %v6278_v44  ;;  %v4054_v44 = vld [vmem:[%s5979_s27 + $0x151] sm:$0xff] }
 0x118   : > { %4999 = vmatmul.mubr.msk.f32.gmra.mrb[24].mxu1 %vm277_vm0, %v6625_v27 }
 0x119   : > { %5295 = vmatmul.mubr.msk.f32.gmra.mrb[8].mxu0 %vm277_vm0, %v6293_v48  ;;  %5001 = vmatprep.mubr.msk.f32.mxu1 %vm277_vm0, %v6630_v24  ;;  %v4056_v48 = vld [vmem:[%s5979_s27 + $0x169] sm:$0xff] }
 0x11a   : > { %5297 = vmatprep.mubr.msk.f32.mxu0 %vm277_vm0, %v6299_v50  ;;  %v4057_v50 = vld [vmem:[%s5979_s27 + $0x171] sm:$0xff] }
 0x11c   : > { %5002 = vmatmul.mubr.msk.f32.gmra.mrb[26].mxu1 %vm277_vm0, %v6639_v40 }
 0x11d   : > { %5298 = vmatmul.mubr.msk.f32.gmra.mrb[10].mxu0 %vm277_vm0, %v6313_v52  ;;  %5004 = vmatprep.mubr.msk.f32.mxu1 %vm277_vm0, %v6644_v35  ;;  %v4049_v35 = vld [vmem:[%s5979_s27 + $0x111] sm:$0xff]  ;;  %v7225_v52 = vld [vmem:[#allocation38_spill] sm:$0xff] }
 0x11e   : > { %5300 = vmatprep.mubr.msk.f32.mxu0 %vm277_vm0, %v6319_v56  ;;  %v4346_v56 = vld [vmem:[%s5979_s27 + $0x19a] sm:$0xff] }
 0x120   : > { %5005 = vmatmul.mubr.msk.f32.gmra.mrb[28].mxu1 %vm277_vm0, %v6653_v32 }
 0x121   : > { %5301 = vmatmul.mubr.msk.f32.gmra.mrb[12].mxu0 %vm277_vm0, %v6333_v58  ;;  %5007 = vmatprep.mubr.msk.f32.mxu1 %vm277_vm0, %v6726_v9  ;;  %v4347_v58 = vld [vmem:[%s5979_s27 + $0x1a2] sm:$0xff] }
 0x122   : > { %5303 = vmatprep.mubr.msk.f32.mxu0 %vm277_vm0, %v6337_v61  ;;  %v3744_v61 = vld [vmem:[%s7099_s2] sm:$0xff] }
 0x124   : > { %5008 = vmatmul.mubr.msk.f32.gmra.mrb[30].mxu1 %vm277_vm0, %v6737_v13 }
 0x125   : > { %5304 = vmatmul.mubr.msk.f32.gmra.mrb[14].mxu0 %vm277_vm0, %v6354_v16  ;;  %5050 = vmatprep.mubr.msk.f32.mxu1 %vm277_vm0, %v4044_v15  ;;  %v5845_v16 = vmov 0  }
 0x126   : > { %5306 = vmatprep.mubr.msk.f32.mxu0 %vm277_vm0, %v6360_v19  ;;  %5779 = vset.pattern.permute.xlu1 %v5845_v16  ;;  %v3752_v19 = vld [vmem:[%s7100_s3] sm:$0xff] }
 0x127   : > { %3747 = vperm.xlu1 %5779, %v3744_v61  }
 0x128   : > { %5051 = vmatmul.mubr.msk.f32.vlgmr.msra.gmra.mrb[16].mxu1 %vm277_vm0, %v4045_v21 }
 0x129   : > { %5307 = vmatmul.mubr.msk.f32.gmra.mrb[16].mxu0 %vm277_vm0, %v6380_v33  ;;  %5053 = vmatprep.mubr.msk.f32.mxu1 %vm277_vm0, %v4046_v23 }
 0x12a   : > { %5309 = vmatprep.mubr.msk.f32.mxu0 %vm277_vm0, %v6386_v60 }
 0x12b   : > { %3755 = vperm.xlu1 %5779, %v3752_v19  }
 0x12c   : > { %5054 = vmatmul.mubr.msk.f32.gmra.mrb[18].mxu1 %vm277_vm0, %v4047_v29 }
 0x12d   : > { %5310 = vmatmul.mubr.msk.f32.gmra.mrb[18].mxu0 %vm277_vm0, %v6406_v26  ;;  %5056 = vmatprep.mubr.msk.f32.mxu1 %vm277_vm0, %v4048_v31 }
 0x12e   : > { %5312 = vmatprep.mubr.msk.f32.mxu0 %vm277_vm0, %v6412_v57  ;;  %v7226_v57 = vld [vmem:[#allocation40_spill] sm:$0xff] }
 0x130   : > { %5057 = vmatmul.mubr.msk.f32.gmra.mrb[20].mxu1 %vm277_vm0, %v4049_v35 }
 0x131   : > { %5313 = vmatmul.mubr.msk.f32.gmra.mrb[20].mxu0 %vm277_vm0, %v6432_v0  ;;  %5059 = vmatprep.mubr.msk.f32.mxu1 %vm277_vm0, %v4050_v36 }
 0x132   : > { %5315 = vmatprep.mubr.msk.f32.mxu0 %vm277_vm0, %v6438_v47  ;;  %v4055_v47 = vld [vmem:[%s5979_s27 + $0x159] sm:$0xff]  ;;  %s188_s27 = sand.u32 1, %s5835_s16  }
 0x133   : > { %s3842_s8 = sshll.u32 %s188_s27, 4  ;;  %s3765_s20 = scalar_lea.sflag [#allocation3], %s188_s27 }
 0x134   : > { %5060 = vmatmul.mubr.msk.f32.gmra.mrb[22].mxu1 %vm277_vm0, %v4051_v38  ;;  %s190_s9 = scalar_lea.vmem [#allocation2], %s3842_s8 }
 0x135   : > { %5316 = vmatmul.mubr.msk.f32.gmra.mrb[22].mxu0 %vm277_vm0, %v6454_v63  ;;  %5062 = vmatprep.mubr.msk.f32.mxu1 %vm277_vm0, %v4052_v42  ;;  %s3779_s11 = sshll.u32 %s190_s9, 4  ;;  %s7057_s11 = int_to_ptr.vmem [resolvable:$true] %s3779_s11 }
 0x136   : > { %5318 = vmatprep.mubr.msk.f32.mxu0 %vm277_vm0, %v6460_v51  ;;  %s5781_s22 = scalar_lea.vmem %s7057_s11, 256  ;;  %p5788_p0 = scmp.lt.s32.totalorder %s7057_s11, %s5786_s23 }
 0x137   : > { %p5782_p11 = scmp.ne.s32.totalorder %s7057_s11, %s5781_s22  ;;  %p5789_p1 = scmp.lt.s32.totalorder %s5787_s28, %s5781_s22 }
 0x138   : > { %5063 = vmatmul.mubr.msk.f32.gmra.mrb[24].mxu1 %vm277_vm0, %v4053_v43 }
 0x139   : > { %5319 = vmatmul.mubr.msk.f32.gmra.mrb[24].mxu0 %vm277_vm0, %v7188_v53  ;;  %5065 = vmatprep.mubr.msk.f32.mxu1 %vm277_vm0, %v4054_v44  ;;  %p5783_p12 = pnand %p5782_p11, %p5910_p5  ;;  %p5790_p2 = por %p5789_p1, %p5788_p0 }
 0x13a   : > { %5321 = vmatprep.mubr.msk.f32.mxu0 %vm277_vm0, %v7190_v59 }
 0x13b   : > { %p5784_p13 = pneg %p5783_p12 }
 0x13c   : > { %5066 = vmatmul.mubr.msk.f32.gmra.mrb[26].mxu1 %vm277_vm0, %v4055_v47 }
 0x13d   : > { %5322 = vmatmul.mubr.msk.f32.gmra.mrb[26].mxu0 %vm277_vm0, %v7192_v1  ;;  %5068 = vmatprep.mubr.msk.f32.mxu1 %vm277_vm0, %v4056_v48  ;;  %p5791_p3 = pnand %p5790_p2, %p5784_p13 }
 0x13e   : > { %5324 = vmatprep.mubr.msk.f32.mxu0 %vm277_vm0, %v7225_v52 }
 0x140   : > { %5069 = vmatmul.mubr.msk.f32.gmra.mrb[28].mxu1 %vm277_vm0, %v4057_v50 }
 0x141   : > { %5325 = vmatmul.mubr.msk.f32.gmra.mrb[28].mxu0 %vm277_vm0, %v7226_v57  ;;  %5071 = vmatprep.mubr.msk.f32.mxu1 %vm277_vm0, %v6886_v6 }
 0x142   : > { %5327 = vmatprep.mubr.msk.f32.mxu0 %vm277_vm0, %v4346_v56 }
 0x144   : > { %5072 = vmatmul.mubr.msk.f32.gmra.mrb[30].mxu1 %vm277_vm0, %v6897_v18 }
 0x145   : > { %5328 = vmatmul.mubr.msk.f32.gmra.mrb[30].mxu0 %vm277_vm0, %v4347_v58 }
 0x1bb   : > { %v4964_v32 = vpop.f32.mrb[0].mxu1 }
 0x1bc   : > { %v1518_v33 = vpop.f32.mrb[1].mxu1 }
 0x1bf   : > { %v4967_v60 = vpop.f32.mrb[2].mxu1 }
 0x1c0   : > { %v1528_v26 = vpop.f32.mrb[3].mxu1 }
 0x1c3   : > { %v4970_v0 = vpop.f32.mrb[4].mxu1 }
 0x1c4   : > { %v1538_v63 = vpop.f32.mrb[5].mxu1 }
 0x1c7   : > { %v4973_v51 = vpop.f32.mrb[6].mxu1 }
 0x1c8   : > { %v1548_v12 = vpop.f32.mrb[7].mxu1 }
 0x1cb   : > { %v4976_v20 = vpop.f32.mrb[8].mxu1 }
 0x1cc   : > { %v1558_v8 = vpop.f32.mrb[9].mxu1 }
 0x1cf   : > { %v4979_v22 = vpop.f32.mrb[10].mxu1 }
 0x1d0   : > { %v1568_v37 = vpop.f32.mrb[11].mxu1 }
 0x1d3   : > { %v4982_v11 = vpop.f32.mrb[12].mxu1 }
 0x1d4   : > { %v1578_v34 = vpop.f32.mrb[13].mxu1 }
 0x1d7   : > { %v4985_v27 = vpop.f32.mrb[14].mxu1 }
 0x1d8   : > { %v1588_v24 = vpop.f32.mrb[15].mxu1 }
 0x1dc   : > { %v5284_v40 = vpop.f32.mrb[0].mxu0 }
 0x1dd   : > { %v5482_v9 = vadd.f32 %v5284_v40, %v4964_v32  ;;  %v3489_v13 = vpop.f32.mrb[1].mxu0 }
 0x1de   : > { %v5483_v53 = vadd.f32 %v3489_v13, %v1518_v33 }
 0x1e0   : > { %v5287_v59 = vpop.f32.mrb[2].mxu0  ;;  %3680 = vxpose.xlu0.b32.start [1/16] (narrow) %v5483_v53, 8 }
 0x1e1   : > { %v5484_v1 = vadd.f32 %v5287_v59, %v4967_v60  ;;  %v3499_v25 = vpop.f32.mrb[3].mxu0 }
 0x1e2   : > { %v5485_v45 = vadd.f32 %v3499_v25, %v1528_v26 }
 0x1e4   : > { %v5290_v46 = vpop.f32.mrb[4].mxu0  ;;  %3681 = vxpose.xlu0.b32.cont [2/16] (narrow) %v5482_v9, 8 }
 0x1e5   : > { %v5486_v54 = vadd.f32 %v5290_v46, %v4970_v0  ;;  %v3509_v62 = vpop.f32.mrb[5].mxu0 }
 0x1e6   : > { %v5487_v2 = vadd.f32 %v3509_v62, %v1538_v63 }
 0x1e8   : > { %v5293_v10 = vpop.f32.mrb[6].mxu0  ;;  %3682 = vxpose.xlu0.b32.cont [3/16] (narrow) %v5485_v45, 8 }
 0x1e9   : > { %v5488_v3 = vadd.f32 %v5293_v10, %v4973_v51  ;;  %v3519_v4 = vpop.f32.mrb[7].mxu0 }
 0x1ea   : > { %v5489_v5 = vadd.f32 %v3519_v4, %v1548_v12 }
 0x1ec   : > { %v5296_v6 = vpop.f32.mrb[8].mxu0  ;;  %3683 = vxpose.xlu0.b32.cont [4/16] (narrow) %v5484_v1, 8 }
 0x1ed   : > { %v5490_v55 = vadd.f32 %v5296_v6, %v4976_v20  ;;  %v3529_v14 = vpop.f32.mrb[9].mxu0 }
 0x1ee   : > { %v5491_v41 = vadd.f32 %v3529_v14, %v1558_v8 }
 0x1f0   : > { %v5299_v18 = vpop.f32.mrb[10].mxu0  ;;  %3684 = vxpose.xlu0.b32.cont [5/16] (narrow) %v5487_v2, 8 }
 0x1f1   : > { %v5492_v49 = vadd.f32 %v5299_v18, %v4979_v22  ;;  %v3539_v17 = vpop.f32.mrb[11].mxu0 }
 0x1f2   : > { %v5493_v28 = vadd.f32 %v3539_v17, %v1568_v37 }
 0x1f4   : > { %v5302_v7 = vpop.f32.mrb[12].mxu0  ;;  %3685 = vxpose.xlu0.b32.cont [6/16] (narrow) %v5486_v54, 8 }
 0x1f5   : > { %v5494_v30 = vadd.f32 %v5302_v7, %v4982_v11  ;;  %v3549_v39 = vpop.f32.mrb[13].mxu0 }
 0x1f6   : > { %v5495_v15 = vadd.f32 %v3549_v39, %v1578_v34 }
 0x1f8   : > { %v5305_v21 = vpop.f32.mrb[14].mxu0  ;;  %3686 = vxpose.xlu0.b32.cont [7/16] (narrow) %v5489_v5, 8 }
 0x1f9   : > { %v7046_v23 = vadd.f32 %v5305_v21, %v4985_v27  ;;  %v3559_v29 = vpop.f32.mrb[15].mxu0 }
 0x1fa   : > { %v5497_v31 = vadd.f32 %v3559_v29, %v1588_v24 }
 0x1fb   : > { %v5052_v35 = vpop.f32.mrb[16].mxu1 }
 0x1fc   : > { %v5308_v36 = vpop.f32.mrb[16].mxu0  ;;  %3687 = vxpose.xlu0.b32.cont [8/16] (narrow) %v5488_v3, 8  ;;  %v1992_v38 = vpop.f32.mrb[17].mxu1 }
 0x1fd   : > { %v5498_v42 = vadd.f32 %v5308_v36, %v5052_v35  ;;  %v3569_v43 = vpop.f32.mrb[17].mxu0 }
 0x1fe   : > { %v5499_v44 = vadd.f32 %v3569_v43, %v1992_v38 }
 0x1ff   : > { %v5055_v47 = vpop.f32.mrb[18].mxu1 }
 0x200   : > { %v5311_v48 = vpop.f32.mrb[18].mxu0  ;;  %3688 = vxpose.xlu0.b32.cont [9/16] (narrow) %v5491_v41, 8  ;;  %3712 = vxpose.xlu1.b32.start [1/16] (narrow) %v5499_v44, 8  ;;  %v2002_v50 = vpop.f32.mrb[19].mxu1 }
 0x201   : > { %v5500_v52 = vadd.f32 %v5311_v48, %v5055_v47  ;;  %v3579_v56 = vpop.f32.mrb[19].mxu0 }
 0x202   : > { %v5501_v57 = vadd.f32 %v3579_v56, %v2002_v50 }
 0x203   : > { %v5058_v58 = vpop.f32.mrb[20].mxu1 }
 0x204   : > { %v5314_v61 = vpop.f32.mrb[20].mxu0  ;;  %3689 = vxpose.xlu0.b32.cont [10/16] (narrow) %v5490_v55, 8  ;;  %3713 = vxpose.xlu1.b32.cont [2/16] (narrow) %v5498_v42, 8  ;;  %v2012_v19 = vpop.f32.mrb[21].mxu1 }
 0x205   : > { %v5502_v32 = vadd.f32 %v5314_v61, %v5058_v58  ;;  %v3589_v33 = vpop.f32.mrb[21].mxu0  ;;  %v3748_v55 = vpop.permute.xlu1 %3747 }
 0x206   : > { %v5503_v60 = vadd.f32 %v3589_v33, %v2012_v19 }
 0x207   : > { %v5061_v26 = vpop.f32.mrb[22].mxu1 }
 0x208   : > { %v5317_v0 = vpop.f32.mrb[22].mxu0  ;;  %3690 = vxpose.xlu0.b32.cont [11/16] (narrow) %v5493_v28, 8  ;;  %3714 = vxpose.xlu1.b32.cont [3/16] (narrow) %v5501_v57, 8  ;;  %v2022_v63 = vpop.f32.mrb[23].mxu1 }
 0x209   : > { %v5504_v51 = vadd.f32 %v5317_v0, %v5061_v26  ;;  %v3599_v12 = vpop.f32.mrb[23].mxu0  ;;  %v3756_v18 = vpop.permute.xlu1 %3755 }
 0x20a   : > { %v5505_v20 = vadd.f32 %v3599_v12, %v2022_v63 }
 0x20b   : > { %v5064_v8 = vpop.f32.mrb[24].mxu1 }
 0x20c   : > { %v5320_v22 = vpop.f32.mrb[24].mxu0  ;;  %3691 = vxpose.xlu0.b32.cont [12/16] (narrow) %v5492_v49, 8  ;;  %3715 = vxpose.xlu1.b32.cont [4/16] (narrow) %v5500_v52, 8  ;;  %v2032_v37 = vpop.f32.mrb[25].mxu1 }
 0x20d   : > { %v5506_v11 = vadd.f32 %v5320_v22, %v5064_v8  ;;  %v3609_v34 = vpop.f32.mrb[25].mxu0 }
 0x20e   : > { %v5507_v27 = vadd.f32 %v3609_v34, %v2032_v37 }
 0x20f   : > { %v5067_v24 = vpop.f32.mrb[26].mxu1 }
 0x210   : > { %v5323_v40 = vpop.f32.mrb[26].mxu0  ;;  %3692 = vxpose.xlu0.b32.cont [13/16] (narrow) %v5495_v15, 8  ;;  %3716 = vxpose.xlu1.b32.cont [5/16] (narrow) %v5503_v60, 8  ;;  %v2042_v9 = vpop.f32.mrb[27].mxu1 }
 0x211   : > { %v5508_v13 = vadd.f32 %v5323_v40, %v5067_v24  ;;  %v3619_v53 = vpop.f32.mrb[27].mxu0 }
 0x212   : > { %v5509_v59 = vadd.f32 %v3619_v53, %v2042_v9 }
 0x213   : > { %v5070_v1 = vpop.f32.mrb[28].mxu1 }
 0x214   : > { %v5326_v25 = vpop.f32.mrb[28].mxu0  ;;  %3693 = vxpose.xlu0.b32.cont [14/16] (narrow) %v5494_v30, 8  ;;  %3717 = vxpose.xlu1.b32.cont [6/16] (narrow) %v5502_v32, 8  ;;  %v2052_v45 = vpop.f32.mrb[29].mxu1 }
 0x215   : > { %v5510_v46 = vadd.f32 %v5326_v25, %v5070_v1  ;;  %v3629_v54 = vpop.f32.mrb[29].mxu0 }
 0x216   : > { %v5511_v62 = vadd.f32 %v3629_v54, %v2052_v45 }
 0x217   : > { %v5073_v2 = vpop.f32.mrb[30].mxu1 }
 0x218   : > { %v5329_v10 = vpop.f32.mrb[30].mxu0  ;;  %3694 = vxpose.xlu0.b32.cont [15/16] (narrow) %v5497_v31, 8  ;;  %3718 = vxpose.xlu1.b32.cont [7/16] (narrow) %v5505_v20, 8  ;;  %v2062_v3 = vpop.f32.mrb[31].mxu1 }
 0x219   : > { %v5512_v4 = vadd.f32 %v5329_v10, %v5073_v2  ;;  %v3639_v5 = vpop.f32.mrb[31].mxu0 }
 0x21a   : > { %v5513_v6 = vadd.f32 %v3639_v5, %v2062_v3 }
 0x21c   : > { %3695 = vxpose.xlu0.b32.end [16/16] (narrow) %v7046_v23, 8  ;;  %3719 = vxpose.xlu1.b32.cont [8/16] (narrow) %v5504_v51, 8 }
 0x220   : > { %3720 = vxpose.xlu1.b32.cont [9/16] (narrow) %v5507_v27, 8 }
 0x224   : > { %3721 = vxpose.xlu1.b32.cont [10/16] (narrow) %v5506_v11, 8 }
 0x228   : > { %3722 = vxpose.xlu1.b32.cont [11/16] (narrow) %v5509_v59, 8 }
 0x22c   : > { %3723 = vxpose.xlu1.b32.cont [12/16] (narrow) %v5508_v13, 8 }
 0x230   : > { %3724 = vxpose.xlu1.b32.cont [13/16] (narrow) %v5511_v62, 8 }
 0x234   : > { %3725 = vxpose.xlu1.b32.cont [14/16] (narrow) %v5510_v46, 8 }
 0x238   : > { %3726 = vxpose.xlu1.b32.cont [15/16] (narrow) %v5513_v6, 8 }
 0x23c   : > { %3727 = vxpose.xlu1.b32.end [16/16] (narrow) %v5512_v4, 8 }
 0x245   : > { %5780 = vset.pattern.permute.xlu0 %v5845_v16 }
 0x260   : > { %v3696_v14 = vpop.trf.xlu0 }
 0x261   : > { %v3750_v41 = vmul.f32 %v3748_v55, %v3696_v14 }
 0x263   : > { %v3758_v49 = vadd.f32 %v3756_v18, %v3750_v41 }
 0x265   : > { %v3760_v17 = vmax.f32 %v3758_v49, 0.0 }
 0x267   : > { %3762 = vst [vmem:[%s190_s9] sm:$0xff] %v3760_v17 }
 0x280   : > { %v3728_v28 = vpop.trf.xlu1 }
 0x281   : > { %v3751_v7 = vmul.f32 %v3748_v55, %v3728_v28 }
 0x283   : > { %v3759_v30 = vadd.f32 %v3756_v18, %v3751_v7 }
 0x285   : > { %v3761_v39 = vmax.f32 %v3759_v30, 0.0 }
 0x287   : > { %3763 = vst [vmem:[%s190_s9 + $0x8] sm:$0xff] %v3761_v39 }
 0x288   : > { %5794 = shalt.err (!%p5791_p3)
}
 0x289   : > { %s5795_s29 = scalar_lea.hbm %s7055_s14, 256  ;;  %s5799_s6 = scalar_lea.hbm %s7101_s4, 512 }
 0x28a   : > { %p5796_p4 = scmp.ne.s32.totalorder %s7055_s14, %s5795_s29  ;;  %p5800_p9 = scmp.lt.u32.totalorder %s7055_s14, %s7101_s4 }
 0x28b   : > { %p5801_p10 = scmp.lt.u32.totalorder %s5799_s6, %s5795_s29  ;;  %p5803_p12 = scmp.lt.u32.totalorder %s5795_s29, %s7055_s14 }
 0x28c   : > { %p5797_p7 = pnand %p5796_p4, %p5910_p5 }
 0x28d   : > { %p5802_p11 = por %p5801_p10, %p5800_p9 }
 0x28e   : > { %p5798_p8 = pneg %p5797_p7 }
 0x28f   : > { %p5804_p13 = por %p5803_p12, %p5802_p11 }
 0x291   : > { %p5805_p0 = pnand %p5804_p13, %p5798_p8 }
 0x293   : > { %5808 = shalt.err (!%p5805_p0)
}
 0x294   : > { %5739 = dma.vmem_to_hbm [thread:$0]  (%p5910_p5), %s7057_s11, 256, %s7055_s14, %s3765_s20  }
 0x295 PF: > { %p5745_p1 = scmp.ge.s32.totalorder %s5843_s18, 2  ;;  %s3791_s8 = sand.u32 1, %s5831_s15  }
 0x296   : > { %s3792_s9 = scalar_lea.sflag [#allocation3], %s3791_s8 }
 0x297   : > { %p5742_p2 = pnand %p5745_p1, %p5914_p6 }
 0x299   : > { %5826 = dma.done.wait (!%p5742_p2), %s3792_s9, 256  }
 0x29a   : > { %5828 = vsyncadd (!%p5742_p2), %s3792_s9, 4294967040  ;;  %p14_p3 = scmp.ge.s32.totalorder %s5897_s21, 4   ;;  %s7227_s15 = smov %s5835_s16 }
 0x29b   : > { %s7228_s16 = smov %s5839_s17  ;;  %s7229_s17 = smov %s5908_s24 }
 0x29c   : > { %s7230_s18 = smov %s5897_s21  ;;  %16 = sbr.rel (!%p14_p3) target bundleno = 3 (0x3), region = 81 }
 0x2a3   :  { %3797 = vsyncpa [#allocation3], 1 }
 0x2a4   :  { %3799 = vsyncpa [#allocation3 + $0x1], 1 }

</bundles_post_ra>
